<compile_context>
chip_gen: v7x
topology: tpu7x:2x2x1
jax: 0.10.0
libtpu: 0.0.40
codegen_flags: <defaults>
</compile_context>

<pallas_src>
import functools

import jax
import jax.numpy as jnp
from jax.experimental import pallas as pl
from jax.experimental.pallas import tpu as pltpu


# ----------------------------------------------------------------------------
# Fused DsConv2d kernel
# ----------------------------------------------------------------------------

def _dsconv2d_kernel(x_ref, dw_ref, pw_ref, b_ref, o_ref, *, k, stride, th, wo):
    """Fused depthwise kxk (VPU) + pointwise 1x1 (MXU).

    x_ref : (1, s*s, Hph, Wph, Cin) bf16  phase-decomposed padded NHWC image of this batch
    dw_ref: (k*k, 1, Cin)  f32  depthwise weights, tap-major (t = kh*k + kw)
    pw_ref: (Cout, Cin)    bf16 pointwise weights
    b_ref : (Cout, 1)      f32  fused bias  (pw_b + PW @ dw_b)
    o_ref : (1, Cout, th*wo) f32 output tile, NCHW-flat (lane-dense store)
    """
    cin = x_ref.shape[-1]
    i0 = pl.program_id(1) * th                     # first output row of this row tile

    # --- depthwise kxk: tap MACs on the VPU, f32 accumulation, contiguous VMEM slices ---
    acc = jnp.zeros((th, wo, cin), jnp.float32)
    for kh in range(k):
        for kw in range(k):
            phase = (kh % stride) * stride + (kw % stride)   # static python int
            tap = x_ref[0, phase,
                        pl.ds(i0 + kh // stride, th),
                        pl.ds(kw // stride, wo), :]
            acc = acc + tap.astype(jnp.float32) * dw_ref[kh * k + kw]

    # --- pointwise 1x1 on the MXU: (Cout,Cin) . (th*wo,Cin)^T -> (Cout, th*wo) ---
    accm = acc.reshape(th * wo, cin)               # collapse rows; minor dim (Cin) unchanged
    yt = jax.lax.dot_general(
        pw_ref[...], accm.astype(pw_ref.dtype),
        dimension_numbers=(((1,), (1,)), ((), ())),
        preferred_element_type=jnp.float32)
    o_ref[0] = yt + b_ref[...]                     # fused bias epilogue, lane-dense store


def _pick_row_tile(ho, wo, max_pixels=2048):
    """Largest row tile t < ho that divides ho, keeps the store lane-dense
    ((t*wo) % 128 == 0) and bounds per-step work; fall back to the full height."""
    for t in range(ho - 1, 0, -1):
        if ho % t == 0 and (t * wo) % 128 == 0 and t * wo <= max_pixels:
            return t
    return ho


@functools.partial(jax.jit, static_argnames=("kernel_size", "padding", "stride"))
def ds_conv2d(x, dw_w, dw_b, pw_w, pw_b, *, kernel_size=3, padding=1, stride=1):
    """DsConv2d forward.  x: NCHW f32.  Weights in PyTorch layout:
    dw_w (Cin,1,k,k), dw_b (Cin,), pw_w (Cout,Cin,1,1), pw_b (Cout,).  Returns NCHW f32."""
    B, Cin, H, W = x.shape
    k, p, s = kernel_size, padding, stride
    Cout = pw_w.shape[0]
    Ho = (H + 2 * p - k) // s + 1
    Wo = (W + 2 * p - k) // s + 1
    Hp, Wp = H + 2 * p, W + 2 * p
    Hpp, Wpp = pl.cdiv(Hp, s) * s, pl.cdiv(Wp, s) * s     # pad up to a multiple of the stride
    Hph, Wph = Hpp // s, Wpp // s

    # NCHW -> NHWC (channels on the 128-lane axis), halo pad once, bf16 for HBM/VMEM traffic.
    xh = jnp.transpose(x, (0, 2, 3, 1))
    xh = jnp.pad(xh, ((0, 0), (p, p + Hpp - Hp), (p, p + Wpp - Wp), (0, 0)))
    xh = xh.astype(jnp.bfloat16)
    # Polyphase decomposition so every in-kernel tap is a contiguous (stride-1) slice:
    #   xp[b, ph*s + pw, i, j, c] == x_pad[b, i*s + ph, j*s + pw, c]
    xp = xh.reshape(B, Hph, s, Wph, s, Cin)
    xp = jnp.transpose(xp, (0, 2, 4, 1, 3, 5)).reshape(B, s * s, Hph, Wph, Cin)

    # Depthwise weights tap-major (k*k, 1, Cin) in f32 (VPU side).
    dw = jnp.transpose(dw_w.reshape(Cin, k * k), (1, 0)).reshape(k * k, 1, Cin)
    dw = dw.astype(jnp.float32)
    # Pointwise weights (Cout, Cin) in bf16 (MXU side).
    pw32 = pw_w.reshape(Cout, Cin).astype(jnp.float32)
    pw = pw32.astype(jnp.bfloat16)
    # Fold the depthwise bias through the 1x1 conv: PW @ (z + b_dw) + b_pw == PW @ z + b_eff.
    b_eff = (pw32 @ dw_b.astype(jnp.float32) + pw_b.astype(jnp.float32)).reshape(Cout, 1)

    th = _pick_row_tile(Ho, Wo)
    grid = (B, Ho // th)
    # TODO(synk): for very large H*W, replace the per-image-resident input with a halo'd
    #             manual-DMA row pipeline (P4) so VMEM stays bounded on v7x (64 MiB).

    out_flat = pl.pallas_call(
        functools.partial(_dsconv2d_kernel, k=k, stride=s, th=th, wo=Wo),
        out_shape=jax.ShapeDtypeStruct((B, Cout, Ho * Wo), jnp.float32),
        grid_spec=pltpu.PrefetchScalarGridSpec(
            num_scalar_prefetch=0,
            grid=grid,
            in_specs=[
                # phase-decomposed image of batch b: DMA'd once per b, resident across row tiles
                pl.BlockSpec((1, s * s, Hph, Wph, Cin), lambda b, i: (b, 0, 0, 0, 0)),
                pl.BlockSpec((k * k, 1, Cin), lambda b, i: (0, 0, 0)),   # resident weights
                pl.BlockSpec((Cout, Cin), lambda b, i: (0, 0)),
                pl.BlockSpec((Cout, 1), lambda b, i: (0, 0)),
            ],
            out_specs=pl.BlockSpec((1, Cout, th * Wo), lambda b, i: (b, 0, i)),
        ),
        compiler_params=pltpu.CompilerParams(
            dimension_semantics=("parallel", "parallel")),
    )(xp, dw, pw, b_eff)

    return out_flat.reshape(B, Cout, Ho, Wo)


# ----------------------------------------------------------------------------
# Plain-JAX (XLA) reference matching the PyTorch module, f32
# ----------------------------------------------------------------------------

def ds_conv2d_ref(x, dw_w, dw_b, pw_w, pw_b, *, padding=1, stride=1):
    Cin = x.shape[1]
    y = jax.lax.conv_general_dilated(
        x, dw_w, window_strides=(stride, stride),
        padding=[(padding, padding), (padding, padding)],
        dimension_numbers=("NCHW", "OIHW", "NCHW"),
        feature_group_count=Cin)
    y = y + dw_b.reshape(1, -1, 1, 1)
    z = jax.lax.conv_general_dilated(
        y, pw_w, window_strides=(1, 1), padding=[(0, 0), (0, 0)],
        dimension_numbers=("NCHW", "OIHW", "NCHW"))
    return z + pw_b.reshape(1, -1, 1, 1)


# ----------------------------------------------------------------------------
# Main
# ----------------------------------------------------------------------------

if __name__ == "__main__":
    key = jax.random.PRNGKey(0)
    ks = jax.random.split(key, 9)

    # DsConv2d(dim_in=32, dim_out=64, kernel_size=3, padding=1, stride=1), input 2x32x16x16
    B, Cin, H, W, Cout = 2, 32, 16, 16, 64
    x = jax.random.normal(ks[0], (B, Cin, H, W), jnp.float32)
    dw_w = 0.05 * jax.random.normal(ks[1], (Cin, 1, 3, 3), jnp.float32)
    dw_b = 0.05 * jax.random.normal(ks[2], (Cin,), jnp.float32)
    pw_w = 0.05 * jax.random.normal(ks[3], (Cout, Cin, 1, 1), jnp.float32)
    pw_b = 0.05 * jax.random.normal(ks[4], (Cout,), jnp.float32)

    out1 = jax.block_until_ready(
        ds_conv2d(x, dw_w, dw_b, pw_w, pw_b, kernel_size=3, padding=1, stride=1))
    assert out1.shape == (B, Cout, H, W), out1.shape
    ref1 = ds_conv2d_ref(x, dw_w, dw_b, pw_w, pw_b, padding=1, stride=1)
    err1 = float(jnp.max(jnp.abs(out1 - ref1)))
    assert err1 < 2e-2, f"stride=1 mismatch: {err1}"

    # stride-2 variant (as used by the DPT act_4_postprocess DsConv2d)
    Cout2 = 32
    dw_w2 = 0.05 * jax.random.normal(ks[5], (Cin, 1, 3, 3), jnp.float32)
    dw_b2 = 0.05 * jax.random.normal(ks[6], (Cin,), jnp.float32)
    pw_w2 = 0.05 * jax.random.normal(ks[7], (Cout2, Cin, 1, 1), jnp.float32)
    pw_b2 = 0.05 * jax.random.normal(ks[8], (Cout2,), jnp.float32)

    out2 = jax.block_until_ready(
        ds_conv2d(x, dw_w2, dw_b2, pw_w2, pw_b2, kernel_size=3, padding=1, stride=2))
    assert out2.shape == (B, Cout2, H // 2, W // 2), out2.shape
    ref2 = ds_conv2d_ref(x, dw_w2, dw_b2, pw_w2, pw_b2, padding=1, stride=2)
    err2 = float(jnp.max(jnp.abs(out2 - ref2)))
    assert err2 < 2e-2, f"stride=2 mismatch: {err2}"

    print("KERNEL_OK")
</pallas_src>

<mosaic_0001>
module attributes {stable_mosaic.version = 11 : i64} {
  func.func @_dsconv2d_kernel(%arg0: i32, %arg1: i32, %arg2: memref<1x1x18x18x32xbf16, #tpu.memory_space<vmem>>, %arg3: memref<9x1x32xf32, #tpu.memory_space<vmem>>, %arg4: memref<64x32xbf16, #tpu.memory_space<vmem>>, %arg5: memref<64x1xf32, #tpu.memory_space<vmem>>, %arg6: memref<1x64x128xf32, #tpu.memory_space<vmem>>) attributes {dimension_semantics = [#tpu.dimension_semantics<parallel>, #tpu.dimension_semantics<parallel>], iteration_bounds = array<i64: 2, 2>, scalar_prefetch = 0 : i64, scratch_operands = 0 : i64, tpu.core_type = #tpu.core_type<tc>, window_params = [{transform_indices = @transform_0, window_bounds = array<i64: 1, 1, 18, 18, 32>}, {pipeline_mode = #tpu.pipeline_mode<synchronous>, transform_indices = @transform_1, window_bounds = array<i64: 9, 1, 32>}, {pipeline_mode = #tpu.pipeline_mode<synchronous>, transform_indices = @transform_2, window_bounds = array<i64: 64, 32>}, {pipeline_mode = #tpu.pipeline_mode<synchronous>, transform_indices = @transform_3, window_bounds = array<i64: 64, 1>}, {transform_indices = @transform_4, window_bounds = array<i64: 1, 64, 128>}]} {
    %c8_i32 = arith.constant 8 : i32
    %0 = arith.muli %arg1, %c8_i32 : i32
    %cst = arith.constant 0.000000e+00 : f32
    %1 = vector.broadcast %cst : f32 to vector<8x16x32xf32>
    %c0_i32 = arith.constant 0 : i32
    %2 = arith.addi %0, %c0_i32 : i32
    %c0 = arith.constant 0 : index
    %c0_0 = arith.constant 0 : index
    %3 = arith.index_cast %2 : i32 to index
    %c0_1 = arith.constant 0 : index
    %c0_2 = arith.constant 0 : index
    %4 = vector.load %arg2[%c0, %c0_0, %3, %c0_1, %c0_2] : memref<1x1x18x18x32xbf16, #tpu.memory_space<vmem>>, vector<1x1x8x16x32xbf16>
    %5 = vector.shape_cast %4 : vector<1x1x8x16x32xbf16> to vector<8x16x32xbf16>
    %6 = arith.extf %5 : vector<8x16x32xbf16> to vector<8x16x32xf32>
    %c0_3 = arith.constant 0 : index
    %c0_4 = arith.constant 0 : index
    %c0_5 = arith.constant 0 : index
    %7 = vector.load %arg3[%c0_3, %c0_4, %c0_5] : memref<9x1x32xf32, #tpu.memory_space<vmem>>, vector<1x1x32xf32>
    %8 = vector.shape_cast %7 : vector<1x1x32xf32> to vector<1x32xf32>
    %9 = vector.shape_cast %8 : vector<1x32xf32> to vector<1x1x32xf32>
    %10 = vector.broadcast %9 : vector<1x1x32xf32> to vector<8x16x32xf32>
    %11 = arith.mulf %6, %10 : vector<8x16x32xf32>
    %12 = arith.addf %1, %11 : vector<8x16x32xf32>
    %c0_i32_6 = arith.constant 0 : i32
    %13 = arith.addi %0, %c0_i32_6 : i32
    %c0_7 = arith.constant 0 : index
    %c0_8 = arith.constant 0 : index
    %14 = arith.index_cast %13 : i32 to index
    %c1 = arith.constant 1 : index
    %c0_9 = arith.constant 0 : index
    %15 = vector.load %arg2[%c0_7, %c0_8, %14, %c1, %c0_9] : memref<1x1x18x18x32xbf16, #tpu.memory_space<vmem>>, vector<1x1x8x16x32xbf16>
    %16 = vector.shape_cast %15 : vector<1x1x8x16x32xbf16> to vector<8x16x32xbf16>
    %17 = arith.extf %16 : vector<8x16x32xbf16> to vector<8x16x32xf32>
    %c1_10 = arith.constant 1 : index
    %c0_11 = arith.constant 0 : index
    %c0_12 = arith.constant 0 : index
    %18 = vector.load %arg3[%c1_10, %c0_11, %c0_12] : memref<9x1x32xf32, #tpu.memory_space<vmem>>, vector<1x1x32xf32>
    %19 = vector.shape_cast %18 : vector<1x1x32xf32> to vector<1x32xf32>
    %20 = vector.shape_cast %19 : vector<1x32xf32> to vector<1x1x32xf32>
    %21 = vector.broadcast %20 : vector<1x1x32xf32> to vector<8x16x32xf32>
    %22 = arith.mulf %17, %21 : vector<8x16x32xf32>
    %23 = arith.addf %12, %22 : vector<8x16x32xf32>
    %c0_i32_13 = arith.constant 0 : i32
    %24 = arith.addi %0, %c0_i32_13 : i32
    %c0_14 = arith.constant 0 : index
    %c0_15 = arith.constant 0 : index
    %25 = arith.index_cast %24 : i32 to index
    %c2 = arith.constant 2 : index
    %c0_16 = arith.constant 0 : index
    %26 = vector.load %arg2[%c0_14, %c0_15, %25, %c2, %c0_16] : memref<1x1x18x18x32xbf16, #tpu.memory_space<vmem>>, vector<1x1x8x16x32xbf16>
    %27 = vector.shape_cast %26 : vector<1x1x8x16x32xbf16> to vector<8x16x32xbf16>
    %28 = arith.extf %27 : vector<8x16x32xbf16> to vector<8x16x32xf32>
    %c2_17 = arith.constant 2 : index
    %c0_18 = arith.constant 0 : index
    %c0_19 = arith.constant 0 : index
    %29 = vector.load %arg3[%c2_17, %c0_18, %c0_19] : memref<9x1x32xf32, #tpu.memory_space<vmem>>, vector<1x1x32xf32>
    %30 = vector.shape_cast %29 : vector<1x1x32xf32> to vector<1x32xf32>
    %31 = vector.shape_cast %30 : vector<1x32xf32> to vector<1x1x32xf32>
    %32 = vector.broadcast %31 : vector<1x1x32xf32> to vector<8x16x32xf32>
    %33 = arith.mulf %28, %32 : vector<8x16x32xf32>
    %34 = arith.addf %23, %33 : vector<8x16x32xf32>
    %c1_i32 = arith.constant 1 : i32
    %35 = arith.addi %0, %c1_i32 : i32
    %c0_20 = arith.constant 0 : index
    %c0_21 = arith.constant 0 : index
    %36 = arith.index_cast %35 : i32 to index
    %c0_22 = arith.constant 0 : index
    %c0_23 = arith.constant 0 : index
    %37 = vector.load %arg2[%c0_20, %c0_21, %36, %c0_22, %c0_23] : memref<1x1x18x18x32xbf16, #tpu.memory_space<vmem>>, vector<1x1x8x16x32xbf16>
    %38 = vector.shape_cast %37 : vector<1x1x8x16x32xbf16> to vector<8x16x32xbf16>
    %39 = arith.extf %38 : vector<8x16x32xbf16> to vector<8x16x32xf32>
    %c3 = arith.constant 3 : index
    %c0_24 = arith.constant 0 : index
    %c0_25 = arith.constant 0 : index
    %40 = vector.load %arg3[%c3, %c0_24, %c0_25] : memref<9x1x32xf32, #tpu.memory_space<vmem>>, vector<1x1x32xf32>
    %41 = vector.shape_cast %40 : vector<1x1x32xf32> to vector<1x32xf32>
    %42 = vector.shape_cast %41 : vector<1x32xf32> to vector<1x1x32xf32>
    %43 = vector.broadcast %42 : vector<1x1x32xf32> to vector<8x16x32xf32>
    %44 = arith.mulf %39, %43 : vector<8x16x32xf32>
    %45 = arith.addf %34, %44 : vector<8x16x32xf32>
    %c1_i32_26 = arith.constant 1 : i32
    %46 = arith.addi %0, %c1_i32_26 : i32
    %c0_27 = arith.constant 0 : index
    %c0_28 = arith.constant 0 : index
    %47 = arith.index_cast %46 : i32 to index
    %c1_29 = arith.constant 1 : index
    %c0_30 = arith.constant 0 : index
    %48 = vector.load %arg2[%c0_27, %c0_28, %47, %c1_29, %c0_30] : memref<1x1x18x18x32xbf16, #tpu.memory_space<vmem>>, vector<1x1x8x16x32xbf16>
    %49 = vector.shape_cast %48 : vector<1x1x8x16x32xbf16> to vector<8x16x32xbf16>
    %50 = arith.extf %49 : vector<8x16x32xbf16> to vector<8x16x32xf32>
    %c4 = arith.constant 4 : index
    %c0_31 = arith.constant 0 : index
    %c0_32 = arith.constant 0 : index
    %51 = vector.load %arg3[%c4, %c0_31, %c0_32] : memref<9x1x32xf32, #tpu.memory_space<vmem>>, vector<1x1x32xf32>
    %52 = vector.shape_cast %51 : vector<1x1x32xf32> to vector<1x32xf32>
    %53 = vector.shape_cast %52 : vector<1x32xf32> to vector<1x1x32xf32>
    %54 = vector.broadcast %53 : vector<1x1x32xf32> to vector<8x16x32xf32>
    %55 = arith.mulf %50, %54 : vector<8x16x32xf32>
    %56 = arith.addf %45, %55 : vector<8x16x32xf32>
    %c1_i32_33 = arith.constant 1 : i32
    %57 = arith.addi %0, %c1_i32_33 : i32
    %c0_34 = arith.constant 0 : index
    %c0_35 = arith.constant 0 : index
    %58 = arith.index_cast %57 : i32 to index
    %c2_36 = arith.constant 2 : index
    %c0_37 = arith.constant 0 : index
    %59 = vector.load %arg2[%c0_34, %c0_35, %58, %c2_36, %c0_37] : memref<1x1x18x18x32xbf16, #tpu.memory_space<vmem>>, vector<1x1x8x16x32xbf16>
    %60 = vector.shape_cast %59 : vector<1x1x8x16x32xbf16> to vector<8x16x32xbf16>
    %61 = arith.extf %60 : vector<8x16x32xbf16> to vector<8x16x32xf32>
    %c5 = arith.constant 5 : index
    %c0_38 = arith.constant 0 : index
    %c0_39 = arith.constant 0 : index
    %62 = vector.load %arg3[%c5, %c0_38, %c0_39] : memref<9x1x32xf32, #tpu.memory_space<vmem>>, vector<1x1x32xf32>
    %63 = vector.shape_cast %62 : vector<1x1x32xf32> to vector<1x32xf32>
    %64 = vector.shape_cast %63 : vector<1x32xf32> to vector<1x1x32xf32>
    %65 = vector.broadcast %64 : vector<1x1x32xf32> to vector<8x16x32xf32>
    %66 = arith.mulf %61, %65 : vector<8x16x32xf32>
    %67 = arith.addf %56, %66 : vector<8x16x32xf32>
    %c2_i32 = arith.constant 2 : i32
    %68 = arith.addi %0, %c2_i32 : i32
    %c0_40 = arith.constant 0 : index
    %c0_41 = arith.constant 0 : index
    %69 = arith.index_cast %68 : i32 to index
    %c0_42 = arith.constant 0 : index
    %c0_43 = arith.constant 0 : index
    %70 = vector.load %arg2[%c0_40, %c0_41, %69, %c0_42, %c0_43] : memref<1x1x18x18x32xbf16, #tpu.memory_space<vmem>>, vector<1x1x8x16x32xbf16>
    %71 = vector.shape_cast %70 : vector<1x1x8x16x32xbf16> to vector<8x16x32xbf16>
    %72 = arith.extf %71 : vector<8x16x32xbf16> to vector<8x16x32xf32>
    %c6 = arith.constant 6 : index
    %c0_44 = arith.constant 0 : index
    %c0_45 = arith.constant 0 : index
    %73 = vector.load %arg3[%c6, %c0_44, %c0_45] : memref<9x1x32xf32, #tpu.memory_space<vmem>>, vector<1x1x32xf32>
    %74 = vector.shape_cast %73 : vector<1x1x32xf32> to vector<1x32xf32>
    %75 = vector.shape_cast %74 : vector<1x32xf32> to vector<1x1x32xf32>
    %76 = vector.broadcast %75 : vector<1x1x32xf32> to vector<8x16x32xf32>
    %77 = arith.mulf %72, %76 : vector<8x16x32xf32>
    %78 = arith.addf %67, %77 : vector<8x16x32xf32>
    %c2_i32_46 = arith.constant 2 : i32
    %79 = arith.addi %0, %c2_i32_46 : i32
    %c0_47 = arith.constant 0 : index
    %c0_48 = arith.constant 0 : index
    %80 = arith.index_cast %79 : i32 to index
    %c1_49 = arith.constant 1 : index
    %c0_50 = arith.constant 0 : index
    %81 = vector.load %arg2[%c0_47, %c0_48, %80, %c1_49, %c0_50] : memref<1x1x18x18x32xbf16, #tpu.memory_space<vmem>>, vector<1x1x8x16x32xbf16>
    %82 = vector.shape_cast %81 : vector<1x1x8x16x32xbf16> to vector<8x16x32xbf16>
    %83 = arith.extf %82 : vector<8x16x32xbf16> to vector<8x16x32xf32>
    %c7 = arith.constant 7 : index
    %c0_51 = arith.constant 0 : index
    %c0_52 = arith.constant 0 : index
    %84 = vector.load %arg3[%c7, %c0_51, %c0_52] : memref<9x1x32xf32, #tpu.memory_space<vmem>>, vector<1x1x32xf32>
    %85 = vector.shape_cast %84 : vector<1x1x32xf32> to vector<1x32xf32>
    %86 = vector.shape_cast %85 : vector<1x32xf32> to vector<1x1x32xf32>
    %87 = vector.broadcast %86 : vector<1x1x32xf32> to vector<8x16x32xf32>
    %88 = arith.mulf %83, %87 : vector<8x16x32xf32>
    %89 = arith.addf %78, %88 : vector<8x16x32xf32>
    %c2_i32_53 = arith.constant 2 : i32
    %90 = arith.addi %0, %c2_i32_53 : i32
    %c0_54 = arith.constant 0 : index
    %c0_55 = arith.constant 0 : index
    %91 = arith.index_cast %90 : i32 to index
    %c2_56 = arith.constant 2 : index
    %c0_57 = arith.constant 0 : index
    %92 = vector.load %arg2[%c0_54, %c0_55, %91, %c2_56, %c0_57] : memref<1x1x18x18x32xbf16, #tpu.memory_space<vmem>>, vector<1x1x8x16x32xbf16>
    %93 = vector.shape_cast %92 : vector<1x1x8x16x32xbf16> to vector<8x16x32xbf16>
    %94 = arith.extf %93 : vector<8x16x32xbf16> to vector<8x16x32xf32>
    %c8 = arith.constant 8 : index
    %c0_58 = arith.constant 0 : index
    %c0_59 = arith.constant 0 : index
    %95 = vector.load %arg3[%c8, %c0_58, %c0_59] : memref<9x1x32xf32, #tpu.memory_space<vmem>>, vector<1x1x32xf32>
    %96 = vector.shape_cast %95 : vector<1x1x32xf32> to vector<1x32xf32>
    %97 = vector.shape_cast %96 : vector<1x32xf32> to vector<1x1x32xf32>
    %98 = vector.broadcast %97 : vector<1x1x32xf32> to vector<8x16x32xf32>
    %99 = arith.mulf %94, %98 : vector<8x16x32xf32>
    %100 = arith.addf %89, %99 : vector<8x16x32xf32>
    %101 = vector.shape_cast %100 : vector<8x16x32xf32> to vector<128x32xf32>
    %c0_60 = arith.constant 0 : index
    %c0_61 = arith.constant 0 : index
    %102 = vector.load %arg4[%c0_60, %c0_61] : memref<64x32xbf16, #tpu.memory_space<vmem>>, vector<64x32xbf16>
    %103 = arith.truncf %101 : vector<128x32xf32> to vector<128x32xbf16>
    %cst_62 = arith.constant dense<0.000000e+00> : vector<64x128xf32>
    %104 = tpu.matmul %102, %103, %cst_62 {dimension_numbers = #tpu.dot_dimension_numbers<[1], [1], [0], [0], [0, 0, 1, 0], [], []>} : vector<64x32xbf16>, vector<128x32xbf16>, vector<64x128xf32> -> vector<64x128xf32>
    %c0_63 = arith.constant 0 : index
    %c0_64 = arith.constant 0 : index
    %105 = vector.load %arg5[%c0_63, %c0_64] : memref<64x1xf32, #tpu.memory_space<vmem>>, vector<64x1xf32>
    %106 = vector.broadcast %105 : vector<64x1xf32> to vector<64x128xf32>
    %107 = arith.addf %104, %106 : vector<64x128xf32>
    %c0_65 = arith.constant 0 : index
    %c0_66 = arith.constant 0 : index
    %c0_67 = arith.constant 0 : index
    %108 = vector.load %arg6[%c0_65, %c0_66, %c0_67] : memref<1x64x128xf32, #tpu.memory_space<vmem>>, vector<1x64x128xf32>
    %109 = vector.shape_cast %108 : vector<1x64x128xf32> to vector<64x128xf32>
    %110 = vector.shape_cast %107 : vector<64x128xf32> to vector<1x64x128xf32>
    tpu.vector_store %arg6[%c0_65, %c0_66, %c0_67], %110 {strides = array<i32>} : memref<1x64x128xf32, #tpu.memory_space<vmem>>, vector<1x64x128xf32>,
    return
  }
  func.func @transform_0(%arg0: i32, %arg1: i32) -> (i32, i32, i32, i32, i32) {
    %c0_i32 = arith.constant 0 : i32
    %c0_i32_0 = arith.constant 0 : i32
    %c0_i32_1 = arith.constant 0 : i32
    %c0_i32_2 = arith.constant 0 : i32
    %c0_i32_3 = arith.constant 0 : i32
    return %arg0, %c0_i32, %c0_i32_0, %c0_i32_1, %c0_i32_2 : i32, i32, i32, i32, i32
  }
  func.func @transform_1(%arg0: i32, %arg1: i32) -> (i32, i32, i32) {
    %c0_i32 = arith.constant 0 : i32
    %c0_i32_0 = arith.constant 0 : i32
    %c0_i32_1 = arith.constant 0 : i32
    %c0_i32_2 = arith.constant 0 : i32
    return %c0_i32, %c0_i32_0, %c0_i32_1 : i32, i32, i32
  }
  func.func @transform_2(%arg0: i32, %arg1: i32) -> (i32, i32) {
    %c0_i32 = arith.constant 0 : i32
    %c0_i32_0 = arith.constant 0 : i32
    %c0_i32_1 = arith.constant 0 : i32
    return %c0_i32, %c0_i32_0 : i32, i32
  }
  func.func @transform_3(%arg0: i32, %arg1: i32) -> (i32, i32) {
    %c0_i32 = arith.constant 0 : i32
    %c0_i32_0 = arith.constant 0 : i32
    %c0_i32_1 = arith.constant 0 : i32
    return %c0_i32, %c0_i32_0 : i32, i32
  }
  func.func @transform_4(%arg0: i32, %arg1: i32) -> (i32, i32, i32) {
    %c0_i32 = arith.constant 0 : i32
    %c0_i32_0 = arith.constant 0 : i32
    return %arg0, %c0_i32, %arg1 : i32, i32, i32
  }
}

</mosaic_0001>

<bundles_post_ra>
// kernel: ds_conv2d.1
= control target key start
LH: loop header
LB: loop body
LE: loop exit
PB: predicated region body
PF: predicated region fallthrough
CT: control target
= control target key end

     0   :  { %s2030_s15 = smov 0   ;;  %s2032_s16 = smov 0   ;;  %s2704_s0 = inlined_call_operand.vmem [shape: bf16[2,1,18,18,32], index: 0, kind: input, shape index: {}]   ;;  %s2705_s1 = inlined_call_operand.vmem [shape: f32[9,1,32], index: 1, kind: input, shape index: {}]   ;;  %s2706_s2 = inlined_call_operand.vmem [shape: bf16[64,32], index: 2, kind: input, shape index: {}]   ;;  %s2707_s3 = inlined_call_operand.vmem [shape: f32[64,1], index: 3, kind: input, shape index: {}]   ;;  %s2708_s4 = inlined_call_operand.vmem [shape: f32[2,64,256], index: 4, kind: output, shape index: {}]  }
   0x1   :  { %s2034_s17 = smov 0   ;;  %s2036_s18 = smov 0  }
   0x2   :  { %s2038_s19 = smov 0   ;;  %s2040_s20 = smov 0  }
   0x3   :  { %s2042_s21 = smov 0  }
   0x4 LB: > { %s23_s22 = sadd.s32 1, %s1994_s19  ;;  %s26_s23 = sadd.s32 1, %s1998_s20  ;;  %s2002_s21 = sphi %s2042_s21, %s14_s21   ;;  %s1998_s20 = sphi %s2040_s20, %s2715_s20   ;;  %s1994_s19 = sphi %s2038_s19, %s2714_s19   ;;  %s1990_s18 = sphi %s2036_s18, %s2713_s18   ;;  %s1986_s17 = sphi %s2034_s17, %s2712_s17   ;;  %s1982_s16 = sphi %s2032_s16, %s2711_s16   ;;  %s1978_s15 = sphi %s2030_s15, %s2710_s15  }
   0x5   : > { %p24_p0 = scmp.ge.s32.totalorder %s23_s22, 2  ;;  %s1639_s24 = sadd.s32 4294967295, %s2002_s21  }
   0x6   : > { %p134_p1 = scmp.ne.s32.totalorder %s1982_s16, %s1978_s15  ;;  %p135_p2 = scmp.eq.s32.totalorder %s1639_s24, 3 }
   0x7   : > { %s2717_s22 = smov (%p24_p0, %s23_s22), 0  ;;  %s2719_s23 = smov (!%p24_p0, %s26_s23), %s1998_s20 }
   0x8   : > { %s120_s25 = ssub.s32 %s1994_s19, %s2717_s22  ;;  %p28_p3 = scmp.ge.s32.totalorder %s2719_s23, 2 }
   0x9   : > { %p1643_p4 = scmp.ge.s32.totalorder %s2002_s21, 1  ;;  %p2076_p5 = por %p135_p2, %p134_p1 }
   0xa   : > { %p176_p6 = scmp.lt.s32.totalorder %s2002_s21, 5  ;;  %s2721_s23 = smov (%p28_p3, %s2719_s23), 0 }
   0xb   : > { %s119_s27 = ssub.s32 %s1998_s20, %s2721_s23  ;;  %s124_s29 = sadd.s32 1, %s1982_s16 }
   0xc   : > { %p177_p7 = pnand %p1643_p4, %p176_p6  ;;  %s121_s28 = sor.u32 %s120_s25, %s119_s27 }
   0xd   : > { %p122_p8 = scmp.eq.s32.totalorder %s121_s28, 0  ;;  %p201_p9 = scmp.lt.s32.totalorder (!%p177_p7), %s1990_s18, 1  ;;  %v2098_v0 = vld [vmem:[%s2705_s1] ss:$0 sm:$0xff] (!%p177_p7)  ;;  %v2105_v1 = vld [vmem:[%s2705_s1 + $0x1] ss:$0 sm:$0xff] (!%p177_p7) }
   0xe   : > { %180 = sbr.rel (%p177_p7) target bundleno = 433 (0x1b1), region = 36  ;;  %vm354_vm0 = vcmask (!%p177_p7), 1046528   ;;  %v2110_v2 = vld [vmem:[%s2705_s1 + $0x2] ss:$0 sm:$0xff] (!%p177_p7)  ;;  %vm499_vm1 = vcmask (!%p177_p7), 1045504   ;;  %vm1384_vm2 = vcmask (!%p177_p7), 261120  }
   0xf   : > { %s2087_s30 = scalar_select %p122_p8, %s1982_s16, %s124_s29  }
  0x10   : > { %s1747_s6 = smul.u32 (!%p177_p7), 96, %s1986_s17  ;;  %v2121_v15 = vld [vmem:[%s2705_s1 + $0x3] ss:$0 sm:$0xff] (!%p177_p7)  ;;  %v2134_v26 = vld [vmem:[%s2705_s1 + $0x4] ss:$0 sm:$0xff] (!%p177_p7)  ;;  %s198_s14 = sand.u32 (!%p177_p7), 1, %s1978_s15  }
  0x11   : > { %v2145_v39 = vld [vmem:[%s2705_s1 + $0x5] ss:$0 sm:$0xff] (!%p177_p7)  ;;  %v2157_v53 = vld [vmem:[%s2705_s1 + $0x6] ss:$0 sm:$0xff] (!%p177_p7)  ;;  %v2167_v59 = vld [vmem:[%s2705_s1 + $0x7] ss:$0 sm:$0xff] (!%p177_p7) }
  0x12   : > { %s1644_s24 = sshll.u32 (!%p177_p7), %s198_s14, 6 }
  0x13   : > { %s200_s25 = scalar_lea.vmem (!%p177_p7), [#allocation2], %s1644_s24 }
  0x15   : > { %s202_s5 = scalar_select %p201_p9, %s1990_s18, 1 }
  0x16   : > { %s1743_s15 = sshll.u32 (%p2076_p5), %s1990_s18, 4 }
  0x17   : > { %s1875_s7 = smul.u32 216, %s202_s5  ;;  %s1502_s27 = sadd.s32 (%p2076_p5), %s1986_s17, %s1743_s15 }
  0x18   : > { %s1744_s28 = sshll.u32 (%p2076_p5), %s1502_s27, 3 }
  0x19   : > { %s205_s10 = scalar_lea.vmem %s2704_s0, %s1875_s7 }
  0x1a   : > { %s2100_s13 = scalar_lea.vmem %s205_s10, %s1747_s6  ;;  %s1504_s6 = scalar_lea.vmem (%p2076_p5), %s2708_s4, %s1744_s28 }
  0x1b   : > { %v1749_v3 = vld [vmem:[%s2100_s13] sm:$0xff]   ;;  %v282_v4 = vld [vmem:[%s2100_s13 + $0x8] sm:$0x1]  ;;  %v1656_v10 = vld [vmem:[%s2100_s13 + $0xc] sm:$0xff]  }
  0x1c   : > { %v427_v5 = vld [vmem:[%s2100_s13] sm:$0xe]  ;;  %v1750_v6 = vunpack.c.l.bf16 %v1749_v3  ;;  %v1751_v7 = vunpack.c.h.bf16 %v1749_v3  ;;  %v290_v8 = vunpack.c.l.bf16 %v282_v4  ;;  %v1674_v11 = vld [vmem:[%s2100_s13 + $0x14] sm:$0x1]  ;;  %v1684_v12 = vld [vmem:[%s2100_s13 + $0xc] sm:$0xe]  ;;  %v592_v13 = vunpack.c.l.bf16 %v1656_v10 }
  0x1d   : > { %v435_v9 = vunpack.c.l.bf16 %v427_v5  ;;  %v593_v14 = vunpack.c.h.bf16 %v1656_v10  ;;  %v656_v16 = vunpack.c.l.bf16 %v1674_v11  ;;  %v800_v17 = vunpack.c.l.bf16 %v1684_v12  ;;  %v1803_v44 = vld [vmem:[%s2100_s13 + $0x18] sm:$0xff]   ;;  %v1714_v54 = vld [vmem:[%s2100_s13 + $0x20] sm:$0x1] }
  0x1e   : > { %v250_v18 = vmul.f32 %v1750_v6, %v2098_v0  ;;  %v251_v19 = vmul.f32 %v1751_v7, %v2098_v0  ;;  %v306_v20 = vmul.f32 %v1750_v6, %v2105_v1  ;;  %v307_v21 = vmul.f32 %v1751_v7, %v2105_v1 }
  0x1f   : > { %v308_v22 = vmul.f32 %v2105_v1, %v290_v8  ;;  %v451_v23 = vmul.f32 %v2110_v2, %v435_v9  ;;  %v452_v24 = vmul.f32 %v1751_v7, %v2110_v2  ;;  %v453_v25 = vmul.f32 %v2110_v2, %v290_v8  ;;  %v1724_v7 = vld [vmem:[%s2100_s13 + $0x18] sm:$0xe]  ;;  %v2177_v8 = vld [vmem:[%s2705_s1 + $0x8] ss:$0 sm:$0xff] }
  0x20   : > { %v355_v27 = vrot.slane %v306_v20, 1  ;;  %v356_v28 = vrot.slane %v307_v21, 1  ;;  %v616_v29 = vmul.f32 %v2121_v15, %v592_v13  ;;  %v617_v30 = vmul.f32 %v2121_v15, %v593_v14 }
  0x21   : > { %v358_v31 = vrot.slane %v308_v22, 1  ;;  %v500_v32 = vrot.slane %v451_v23, 2  ;;  %v501_v33 = vrot.slane %v452_v24, 2  ;;  %v503_v34 = vrot.slane %v453_v25, 2 }
  0x22   : > { %v357_v35 = vsel %vm354_vm0, %v355_v27, %v356_v28  ;;  %v672_v36 = vmul.f32 %v2134_v26, %v592_v13  ;;  %v673_v37 = vmul.f32 %v2134_v26, %v593_v14  ;;  %v674_v38 = vmul.f32 %v2134_v26, %v656_v16 }
  0x23   : > { %v359_v40 = vsel %vm354_vm0, %v356_v28, %v358_v31  ;;  %v411_v41 = vadd.f32 %v357_v35, %v250_v18  ;;  %v502_v42 = vsel %vm499_vm1, %v500_v32, %v501_v33  ;;  %v504_v43 = vsel %vm499_vm1, %v501_v33, %v503_v34  ;;  %v213_v18 = vld [vmem:[%s2100_s13 + $0xc] sm:$0xff]   ;;  %v283_v32 = vld [vmem:[%s2100_s13 + $0x14] sm:$0x1] }
  0x24   : > { %v412_v45 = vadd.f32 %v359_v40, %v251_v19  ;;  %v720_v46 = vrot.slane %v672_v36, 1  ;;  %v721_v47 = vrot.slane %v673_v37, 1  ;;  %v723_v48 = vrot.slane %v674_v38, 1  ;;  %v428_v37 = vld [vmem:[%s2100_s13 + $0xc] sm:$0xe] }
  0x25   : > { %v556_v49 = vadd.f32 %v502_v42, %v411_v41  ;;  %v816_v50 = vmul.f32 %v2145_v39, %v800_v17  ;;  %v817_v51 = vmul.f32 %v2145_v39, %v593_v14  ;;  %v818_v52 = vmul.f32 %v2145_v39, %v656_v16 }
  0x26   : > { %v557_v55 = vadd.f32 %v504_v43, %v412_v45  ;;  %v722_v56 = vsel %vm354_vm0, %v720_v46, %v721_v47  ;;  %v724_v57 = vsel %vm354_vm0, %v721_v47, %v723_v48  ;;  %v2162_v58 = vunpack.c.l.bf16 %v1803_v44 }
  0x27   : > { %v632_v60 = vadd.f32 %v616_v29, %v556_v49  ;;  %v864_v61 = vrot.slane %v816_v50, 2  ;;  %v865_v62 = vrot.slane %v817_v51, 2  ;;  %v867_v63 = vrot.slane %v818_v52, 2 }
  0x28   : > { %v633_v3 = vadd.f32 %v617_v30, %v557_v55  ;;  %v2169_v4 = vunpack.c.h.bf16 %v1803_v44  ;;  %v980_v5 = vmul.f32 %v2162_v58, %v2157_v53  ;;  %v1020_v6 = vunpack.c.l.bf16 %v1714_v54 }
  0x29   : > { %v776_v9 = vadd.f32 %v722_v56, %v632_v60  ;;  %v866_v10 = vsel %vm499_vm1, %v864_v61, %v865_v62  ;;  %v868_v11 = vsel %vm499_vm1, %v865_v62, %v867_v63  ;;  %v1036_v12 = vmul.f32 %v2162_v58, %v2167_v59  ;;  %v1675_v62 = vld [vmem:[%s2100_s13 + $0x20] sm:$0x1] }
  0x2a   : > { %v777_v13 = vadd.f32 %v724_v57, %v633_v3  ;;  %v981_v14 = vmul.f32 %v2169_v4, %v2157_v53  ;;  %v1037_v16 = vmul.f32 %v2169_v4, %v2167_v59  ;;  %v1038_v17 = vmul.f32 %v2167_v59, %v1020_v6 }
  0x2b   : > { %v920_v19 = vadd.f32 %v866_v10, %v776_v9  ;;  %v1084_v20 = vrot.slane %v1036_v12, 1  ;;  %v1164_v21 = vunpack.c.l.bf16 %v1724_v7  ;;  %v1181_v22 = vmul.f32 %v2169_v4, %v2177_v8  ;;  %v1685_v7 = vld [vmem:[%s2100_s13 + $0x18] sm:$0xe] }
  0x2c   : > { %v921_v23 = vadd.f32 %v868_v11, %v777_v13  ;;  %v1085_v24 = vrot.slane %v1037_v16, 1  ;;  %v1087_v25 = vrot.slane %v1038_v17, 1  ;;  %v1182_v27 = vmul.f32 %v2177_v8, %v1020_v6 }
  0x2d   : > { %v996_v28 = vadd.f32 %v980_v5, %v920_v19  ;;  %v1180_v29 = vmul.f32 %v2177_v8, %v1164_v21  ;;  %v1229_v30 = vrot.slane %v1181_v22, 2  ;;  %v229_v31 = vunpack.c.l.bf16 %v213_v18 }
  0x2e   : > { %v997_v33 = vadd.f32 %v981_v14, %v921_v23  ;;  %v1086_v34 = vsel %vm354_vm0, %v1084_v20, %v1085_v24  ;;  %v1088_v35 = vsel %vm354_vm0, %v1085_v24, %v1087_v25  ;;  %v1231_v36 = vrot.slane %v1182_v27, 2 }
  0x2f   : > { %v1140_v38 = vadd.f32 %v1086_v34, %v996_v28  ;;  %v1228_v40 = vrot.slane %v1180_v29, 2  ;;  %v230_v41 = vunpack.c.h.bf16 %v213_v18  ;;  %v252_v42 = vmul.f32 %v2098_v0, %v229_v31 }
  0x30   : > { %v1141_v43 = vadd.f32 %v1088_v35, %v997_v33  ;;  %v1232_v44 = vsel %vm499_vm1, %v1229_v30, %v1231_v36  ;;  %v291_v45 = vunpack.c.l.bf16 %v283_v32  ;;  %v309_v46 = vmul.f32 %v2105_v1, %v229_v31  ;;  %v1698_v31 = vld [vmem:[%s2100_s13 + $0x24] sm:$0xff]  }
  0x31   : > { %v1230_v47 = vsel %vm499_vm1, %v1228_v40, %v1229_v30  ;;  %v253_v48 = vmul.f32 %v2098_v0, %v230_v41  ;;  %v310_v49 = vmul.f32 %v2105_v1, %v230_v41  ;;  %v436_v50 = vunpack.c.l.bf16 %v428_v37 }
  0x32   : > { %v1284_v51 = vadd.f32 %v1230_v47, %v1140_v38  ;;  %v1285_v52 = vadd.f32 %v1232_v44, %v1141_v43  ;;  %v311_v54 = vmul.f32 %v2105_v1, %v291_v45  ;;  %v360_v55 = vrot.slane %v309_v46, 1  ;;  %v1725_v46 = vld [vmem:[%s2100_s13 + $0x24] sm:$0xe] }
  0x33   : > { %v361_v56 = vrot.slane %v310_v49, 1  ;;  %v454_v57 = vmul.f32 %v2110_v2, %v436_v50  ;;  %v455_v60 = vmul.f32 %v2110_v2, %v230_v41  ;;  %v456_v61 = vmul.f32 %v2110_v2, %v291_v45  ;;  %v1715_v41 = vld [vmem:[%s2100_s13 + $0x2c] sm:$0x1] }
  0x34   : > { %v1308_v63 = vpack.c.bf16 %v1285_v52, %v1284_v51  ;;  %v363_v3 = vrot.slane %v311_v54, 1  ;;  %v618_v5 = vmul.f32 %v2162_v58, %v2121_v15  ;;  %v619_v6 = vmul.f32 %v2169_v4, %v2121_v15 }
  0x35   : > { %v362_v9 = vsel %vm354_vm0, %v360_v55, %v361_v56  ;;  %v505_v10 = vrot.slane %v454_v57, 2  ;;  %v506_v11 = vrot.slane %v455_v60, 2  ;;  %v508_v12 = vrot.slane %v456_v61, 2 }
  0x36   : > { %1859 = vmatprep.subr.msk.bf16.mxu0 %vm1384_vm2, %v1308_v63  ;;  %1860 = vmatprep.subr.msk.bf16.mxu1 %vm1384_vm2, %v1308_v63  ;;  %v1398_v13 = vsel %vm1384_vm2, %v1308_v63, 0  ;;  %v364_v14 = vsel %vm354_vm0, %v361_v56, %v363_v3  ;;  %v413_v16 = vadd.f32 %v362_v9, %v252_v42  ;;  %v657_v17 = vunpack.c.l.bf16 %v1675_v62 }
  0x37   : > { %1820 = vmatpush3.bf16.xpose.msra.mxu0 %v1398_v13  ;;  %1851 = vmatpush3.bf16.xpose.msra.mxu1 %v1398_v13  ;;  %v414_v18 = vadd.f32 %v364_v14, %v253_v48  ;;  %v507_v19 = vsel %vm499_vm1, %v505_v10, %v506_v11  ;;  %v509_v20 = vsel %vm499_vm1, %v506_v11, %v508_v12  ;;  %v801_v21 = vunpack.c.l.bf16 %v1685_v7 }
  0x38   : > { %v558_v22 = vadd.f32 %v507_v19, %v413_v16  ;;  %v675_v23 = vmul.f32 %v2162_v58, %v2134_v26  ;;  %v676_v24 = vmul.f32 %v2169_v4, %v2134_v26  ;;  %v677_v25 = vmul.f32 %v2134_v26, %v657_v17 }
  0x39   : > { %v559_v27 = vadd.f32 %v509_v20, %v414_v18  ;;  %v819_v28 = vmul.f32 %v2145_v39, %v801_v21  ;;  %v820_v29 = vmul.f32 %v2169_v4, %v2145_v39  ;;  %v821_v30 = vmul.f32 %v2145_v39, %v657_v17  ;;  %v429_v21 = vld [vmem:[%s2100_s13 + $0x18] sm:$0xe] }
  0x3a   : > { %v634_v32 = vadd.f32 %v618_v5, %v558_v22  ;;  %v725_v33 = vrot.slane %v675_v23, 1  ;;  %v726_v34 = vrot.slane %v676_v24, 1  ;;  %v728_v35 = vrot.slane %v677_v25, 1 }
  0x3b   : > { %v635_v36 = vadd.f32 %v619_v6, %v559_v27  ;;  %v869_v37 = vrot.slane %v819_v28, 2  ;;  %v870_v38 = vrot.slane %v820_v29, 2  ;;  %v872_v40 = vrot.slane %v821_v30, 2  ;;  %v284_v6 = vld [vmem:[%s2100_s13 + $0x20] sm:$0x1] }
  0x3c   : > { %v727_v42 = vsel %vm354_vm0, %v725_v33, %v726_v34  ;;  %v729_v43 = vsel %vm354_vm0, %v726_v34, %v728_v35  ;;  %v958_v44 = vunpack.c.l.bf16 %v1698_v31  ;;  %v959_v45 = vunpack.c.h.bf16 %v1698_v31  ;;  %v1660_v31 = vld [vmem:[%s2100_s13 + $0x24] sm:$0xff]  }
  0x3d   : > { %v778_v47 = vadd.f32 %v727_v42, %v634_v32  ;;  %v779_v48 = vadd.f32 %v729_v43, %v635_v36  ;;  %v871_v49 = vsel %vm499_vm1, %v869_v37, %v870_v38  ;;  %v873_v50 = vsel %vm499_vm1, %v870_v38, %v872_v40  ;;  %v1935_v40 = vld [vmem:[%s2706_s2] sm:$0xff]  }
  0x3e   : > { %v982_v51 = vmul.f32 %v2157_v53, %v958_v44  ;;  %v983_v52 = vmul.f32 %v2157_v53, %v959_v45  ;;  %v1021_v54 = vunpack.c.l.bf16 %v1715_v41  ;;  %v1039_v55 = vmul.f32 %v2167_v59, %v958_v44  ;;  %v1936_v41 = vld [vmem:[%s2706_s2 + $0x10] sm:$0xff]   ;;  %1835 = vmatprep.mubr.msk.bf16.mxu0 %vm1384_vm2, %v1935_v40 }
  0x3f   : > { %v922_v56 = vadd.f32 %v871_v49, %v778_v47  ;;  %v923_v57 = vadd.f32 %v873_v50, %v779_v48  ;;  %v1040_v60 = vmul.f32 %v2167_v59, %v959_v45  ;;  %v1165_v61 = vunpack.c.l.bf16 %v1725_v46  ;;  %v1686_v50 = vld [vmem:[%s2100_s13 + $0x24] sm:$0xe]  ;;  %1839 = vmatprep.mubr.msk.bf16.mxu1 %vm1384_vm2, %v1936_v41 }
  0x40   : > { %v1041_v62 = vmul.f32 %v2167_v59, %v1021_v54  ;;  %v1089_v63 = vrot.slane %v1039_v55, 1  ;;  %v1184_v3 = vmul.f32 %v2177_v8, %v959_v45  ;;  %v1185_v5 = vmul.f32 %v2177_v8, %v1021_v54 }
  0x41   : > { %v998_v7 = vadd.f32 %v982_v51, %v922_v56  ;;  %v999_v9 = vadd.f32 %v983_v52, %v923_v57  ;;  %v1090_v10 = vrot.slane %v1040_v60, 1  ;;  %v1183_v11 = vmul.f32 %v2177_v8, %v1165_v61 }
  0x42   : > { %v1092_v12 = vrot.slane %v1041_v62, 1  ;;  %v1234_v13 = vrot.slane %v1184_v3, 2  ;;  %v1236_v14 = vrot.slane %v1185_v5, 2  ;;  %v254_v16 = vmul.f32 %v2162_v58, %v2098_v0 }
  0x43   : > { %v1091_v17 = vsel %vm354_vm0, %v1089_v63, %v1090_v10  ;;  %v1233_v18 = vrot.slane %v1183_v11, 2  ;;  %v255_v19 = vmul.f32 %v2169_v4, %v2098_v0  ;;  %v292_v20 = vunpack.c.l.bf16 %v284_v6  ;;  %v1804_v11 = vld [vmem:[%s2100_s13 + $0x30] sm:$0xff]  }
  0x44   : > { %v1093_v22 = vsel %vm354_vm0, %v1090_v10, %v1092_v12  ;;  %v1142_v23 = vadd.f32 %v1091_v17, %v998_v7  ;;  %v1237_v24 = vsel %vm499_vm1, %v1234_v13, %v1236_v14  ;;  %v312_v25 = vmul.f32 %v2162_v58, %v2105_v1  ;;  %v1716_v17 = vld [vmem:[%s2100_s13 + $0x38] sm:$0x1] }
  0x45   : > { %v1143_v27 = vadd.f32 %v1093_v22, %v999_v9  ;;  %v1235_v28 = vsel %vm499_vm1, %v1233_v18, %v1234_v13  ;;  %v313_v29 = vmul.f32 %v2169_v4, %v2105_v1  ;;  %v314_v30 = vmul.f32 %v2105_v1, %v292_v20  ;;  %v1726_v18 = vld [vmem:[%s2100_s13 + $0x30] sm:$0xe] }
  0x46   : > { %v1286_v32 = vadd.f32 %v1235_v28, %v1142_v23  ;;  %v365_v33 = vrot.slane %v312_v25, 1  ;;  %v437_v34 = vunpack.c.l.bf16 %v429_v21  ;;  %v458_v35 = vmul.f32 %v2169_v4, %v2110_v2  ;;  %v1676_v4 = vld [vmem:[%s2100_s13 + $0x2c] sm:$0x1] }
  0x47   : > { %v1287_v36 = vadd.f32 %v1237_v24, %v1143_v27  ;;  %v366_v37 = vrot.slane %v313_v29, 1  ;;  %v368_v58 = vrot.slane %v314_v30, 1  ;;  %v459_v38 = vmul.f32 %v2110_v2, %v292_v20 }
  0x48   : > { %v457_v42 = vmul.f32 %v2110_v2, %v437_v34  ;;  %v511_v43 = vrot.slane %v458_v35, 2  ;;  %v596_v44 = vunpack.c.l.bf16 %v1660_v31  ;;  %v597_v45 = vunpack.c.h.bf16 %v1660_v31 }
  0x49   : > { %v1309_v46 = vpack.c.bf16 %v1287_v36, %v1286_v32  ;;  %v367_v47 = vsel %vm354_vm0, %v365_v33, %v366_v37  ;;  %v369_v48 = vsel %vm354_vm0, %v366_v37, %v368_v58  ;;  %v513_v49 = vrot.slane %v459_v38, 2 }
  0x4a   : > { %v415_v51 = vadd.f32 %v367_v47, %v254_v16  ;;  %v416_v52 = vadd.f32 %v369_v48, %v255_v19  ;;  %v510_v54 = vrot.slane %v457_v42, 2  ;;  %v620_v55 = vmul.f32 %v2121_v15, %v596_v44  ;;  %v285_v48 = vld [vmem:[%s2100_s13 + $0x2c] sm:$0x1] }
  0x4b   : > { %1861 = vmatprep.subr.msk.bf16.mxu0 %vm1384_vm2, %v1309_v46  ;;  %1862 = vmatprep.subr.msk.bf16.mxu1 %vm1384_vm2, %v1309_v46  ;;  %v1401_v56 = vsel %vm1384_vm2, %v1309_v46, 0  ;;  %v514_v57 = vsel %vm499_vm1, %v511_v43, %v513_v49  ;;  %v621_v60 = vmul.f32 %v2121_v15, %v597_v45  ;;  %v658_v61 = vunpack.c.l.bf16 %v1676_v4 }
  0x4c   : > { %1822 = vmatpush3.bf16.xpose.msra.mxu0 %v1401_v56  ;;  %1852 = vmatpush3.bf16.xpose.msra.mxu1 %v1401_v56  ;;  %v512_v62 = vsel %vm499_vm1, %v510_v54, %v511_v43  ;;  %v561_v63 = vadd.f32 %v514_v57, %v416_v52  ;;  %v678_v3 = vmul.f32 %v2134_v26, %v596_v44  ;;  %v802_v5 = vunpack.c.l.bf16 %v1686_v50  ;;  %v217_v44 = vld [vmem:[%s2100_s13 + $0x24] sm:$0xff]  }
  0x4d   : > { %v560_v6 = vadd.f32 %v512_v62, %v415_v51  ;;  %v679_v7 = vmul.f32 %v2134_v26, %v597_v45  ;;  %v680_v9 = vmul.f32 %v2134_v26, %v658_v61  ;;  %v823_v10 = vmul.f32 %v2145_v39, %v597_v45 }
  0x4e   : > { %v637_v12 = vadd.f32 %v621_v60, %v561_v63  ;;  %v730_v13 = vrot.slane %v678_v3, 1  ;;  %v822_v14 = vmul.f32 %v2145_v39, %v802_v5  ;;  %v824_v16 = vmul.f32 %v2145_v39, %v658_v61  ;;  %v430_v3 = vld [vmem:[%s2100_s13 + $0x24] sm:$0xe] }
  0x4f   : > { %v636_v19 = vadd.f32 %v620_v55, %v560_v6  ;;  %v731_v20 = vrot.slane %v679_v7, 1  ;;  %v733_v21 = vrot.slane %v680_v9, 1  ;;  %v875_v22 = vrot.slane %v823_v10, 2 }
  0x50   : > { %v874_v23 = vrot.slane %v822_v14, 2  ;;  %v877_v24 = vrot.slane %v824_v16, 2  ;;  %v2292_v25 = vunpack.c.l.bf16 %v1804_v11  ;;  %v2294_v27 = vunpack.c.h.bf16 %v1804_v11 }
  0x51   : > { %v732_v28 = vsel %vm354_vm0, %v730_v13, %v731_v20  ;;  %v734_v29 = vsel %vm354_vm0, %v731_v20, %v733_v21  ;;  %v1022_v30 = vunpack.c.l.bf16 %v1716_v17  ;;  %v1166_v31 = vunpack.c.l.bf16 %v1726_v18 }
  0x52   : > { %v780_v32 = vadd.f32 %v732_v28, %v636_v19  ;;  %v781_v33 = vadd.f32 %v734_v29, %v637_v12  ;;  %v876_v34 = vsel %vm499_vm1, %v874_v23, %v875_v22  ;;  %v878_v35 = vsel %vm499_vm1, %v875_v22, %v877_v24  ;;  %v1677_v19 = vld [vmem:[%s2100_s13 + $0x38] sm:$0x1] }
  0x53   : > { %v984_v36 = vmul.f32 %v2292_v25, %v2157_v53  ;;  %v985_v37 = vmul.f32 %v2294_v27, %v2157_v53  ;;  %v1042_v58 = vmul.f32 %v2292_v25, %v2167_v59  ;;  %v1043_v38 = vmul.f32 %v2294_v27, %v2167_v59 }
  0x54   : > { %v924_v40 = vadd.f32 %v876_v34, %v780_v32  ;;  %v925_v41 = vadd.f32 %v878_v35, %v781_v33  ;;  %v1044_v42 = vmul.f32 %v2167_v59, %v1022_v30  ;;  %v1186_v43 = vmul.f32 %v2177_v8, %v1166_v31  ;;  %v1687_v31 = vld [vmem:[%s2100_s13 + $0x30] sm:$0xe] }
  0x55   : > { %v1094_v45 = vrot.slane %v1042_v58, 1  ;;  %v1095_v4 = vrot.slane %v1043_v38, 1  ;;  %v1187_v46 = vmul.f32 %v2294_v27, %v2177_v8  ;;  %v1188_v47 = vmul.f32 %v2177_v8, %v1022_v30 }
  0x56   : > { %v1000_v49 = vadd.f32 %v984_v36, %v924_v40  ;;  %v1001_v50 = vadd.f32 %v985_v37, %v925_v41  ;;  %v1097_v51 = vrot.slane %v1044_v42, 1  ;;  %v1238_v52 = vrot.slane %v1186_v43, 2 }
  0x57   : > { %v1096_v54 = vsel %vm354_vm0, %v1094_v45, %v1095_v4  ;;  %v1239_v55 = vrot.slane %v1187_v46, 2  ;;  %v1241_v56 = vrot.slane %v1188_v47, 2  ;;  %v233_v57 = vunpack.c.l.bf16 %v217_v44  ;;  %v1702_v47 = vld [vmem:[%s2100_s13 + $0x3c] sm:$0xff]  }
  0x58   : > { %v1098_v60 = vsel %vm354_vm0, %v1095_v4, %v1097_v51  ;;  %v1144_v61 = vadd.f32 %v1096_v54, %v1000_v49  ;;  %v234_v62 = vunpack.c.h.bf16 %v217_v44  ;;  %v293_v63 = vunpack.c.l.bf16 %v285_v48 }
  0x59   : > { %v1145_v5 = vadd.f32 %v1098_v60, %v1001_v50  ;;  %v1240_v6 = vsel %vm499_vm1, %v1238_v52, %v1239_v55  ;;  %v1242_v7 = vsel %vm499_vm1, %v1239_v55, %v1241_v56  ;;  %v256_v9 = vmul.f32 %v2098_v0, %v233_v57 }
  0x5a   : > { %v1288_v10 = vadd.f32 %v1240_v6, %v1144_v61  ;;  %v257_v11 = vmul.f32 %v2098_v0, %v234_v62  ;;  %v315_v12 = vmul.f32 %v2105_v1, %v233_v57  ;;  %v316_v13 = vmul.f32 %v2105_v1, %v234_v62 }
  0x5b   : > { %v1289_v14 = vadd.f32 %v1242_v7, %v1145_v5  ;;  %v317_v16 = vmul.f32 %v2105_v1, %v293_v63  ;;  %v438_v17 = vunpack.c.l.bf16 %v430_v3  ;;  %v461_v18 = vmul.f32 %v2110_v2, %v234_v62 }
  0x5c   : > { %v370_v20 = vrot.slane %v315_v12, 1  ;;  %v371_v21 = vrot.slane %v316_v13, 1  ;;  %v462_v22 = vmul.f32 %v2110_v2, %v293_v63  ;;  %v622_v23 = vmul.f32 %v2292_v25, %v2121_v15  ;;  %v1717_v63 = vld [vmem:[%s2100_s13 + $0x44] sm:$0x1] }
  0x5d   : > { %v1310_v24 = vpack.c.bf16 %v1289_v14, %v1288_v10  ;;  %v373_v28 = vrot.slane %v317_v16, 1  ;;  %v460_v29 = vmul.f32 %v2110_v2, %v438_v17  ;;  %v516_v30 = vrot.slane %v461_v18, 2 }
  0x5e   : > { %v372_v32 = vsel %vm354_vm0, %v370_v20, %v371_v21  ;;  %v518_v33 = vrot.slane %v462_v22, 2  ;;  %v623_v34 = vmul.f32 %v2294_v27, %v2121_v15  ;;  %v659_v35 = vunpack.c.l.bf16 %v1677_v19 }
  0x5f   : > { %1863 = vmatprep.subr.msk.bf16.mxu0 %vm1384_vm2, %v1310_v24  ;;  %1864 = vmatprep.subr.msk.bf16.mxu1 %vm1384_vm2, %v1310_v24  ;;  %v1404_v36 = vsel %vm1384_vm2, %v1310_v24, 0  ;;  %v374_v37 = vsel %vm354_vm0, %v371_v21, %v373_v28  ;;  %v417_v58 = vadd.f32 %v372_v32, %v256_v9  ;;  %v515_v38 = vrot.slane %v460_v29, 2  ;;  %v1727_v9 = vld [vmem:[%s2100_s13 + $0x3c] sm:$0xe] }
  0x60   : > { %1824 = vmatpush3.bf16.xpose.msra.mxu0 %v1404_v36  ;;  %1853 = vmatpush3.bf16.xpose.msra.mxu1 %v1404_v36  ;;  %v418_v40 = vadd.f32 %v374_v37, %v257_v11  ;;  %v519_v41 = vsel %vm499_vm1, %v516_v30, %v518_v33  ;;  %v681_v42 = vmul.f32 %v2292_v25, %v2134_v26  ;;  %v803_v43 = vunpack.c.l.bf16 %v1687_v31 }
  0x61   : > { %v517_v44 = vsel %vm499_vm1, %v515_v38, %v516_v30  ;;  %v682_v45 = vmul.f32 %v2294_v27, %v2134_v26  ;;  %v683_v4 = vmul.f32 %v2134_v26, %v659_v35  ;;  %v826_v46 = vmul.f32 %v2294_v27, %v2145_v39  ;;  %v286_v30 = vld [vmem:[%s2100_s13 + $0x38] sm:$0x1] }
  0x62   : > { %v562_v48 = vadd.f32 %v517_v44, %v417_v58  ;;  %v563_v49 = vadd.f32 %v519_v41, %v418_v40  ;;  %v735_v50 = vrot.slane %v681_v42, 1  ;;  %v825_v51 = vmul.f32 %v2145_v39, %v803_v43  ;;  %v431_v43 = vld [vmem:[%s2100_s13 + $0x30] sm:$0xe] }
  0x63   : > { %v736_v52 = vrot.slane %v682_v45, 1  ;;  %v738_v54 = vrot.slane %v683_v4, 1  ;;  %v827_v55 = vmul.f32 %v2145_v39, %v659_v35  ;;  %v880_v56 = vrot.slane %v826_v46, 2 }
  0x64   : > { %v638_v57 = vadd.f32 %v622_v23, %v562_v48  ;;  %v639_v60 = vadd.f32 %v623_v34, %v563_v49  ;;  %v879_v61 = vrot.slane %v825_v51, 2  ;;  %v962_v62 = vunpack.c.l.bf16 %v1702_v47  ;;  %v1664_v51 = vld [vmem:[%s2100_s13 + $0x3c] sm:$0xff]  }
  0x65   : > { %v737_v3 = vsel %vm354_vm0, %v735_v50, %v736_v52  ;;  %v739_v5 = vsel %vm354_vm0, %v736_v52, %v738_v54  ;;  %v882_v6 = vrot.slane %v827_v55, 2  ;;  %v963_v7 = vunpack.c.h.bf16 %v1702_v47 }
  0x66   : > { %v782_v10 = vadd.f32 %v737_v3, %v638_v57  ;;  %v783_v11 = vadd.f32 %v739_v5, %v639_v60  ;;  %v881_v12 = vsel %vm499_vm1, %v879_v61, %v880_v56  ;;  %v986_v13 = vmul.f32 %v2157_v53, %v962_v62 }
  0x67   : > { %v883_v14 = vsel %vm499_vm1, %v880_v56, %v882_v6  ;;  %v987_v16 = vmul.f32 %v2157_v53, %v963_v7  ;;  %v1023_v17 = vunpack.c.l.bf16 %v1717_v63  ;;  %v1045_v18 = vmul.f32 %v2167_v59, %v962_v62  ;;  %v1678_v6 = vld [vmem:[%s2100_s13 + $0x44] sm:$0x1] }
  0x68   : > { %v926_v19 = vadd.f32 %v881_v12, %v782_v10  ;;  %v927_v20 = vadd.f32 %v883_v14, %v783_v11  ;;  %v1046_v21 = vmul.f32 %v2167_v59, %v963_v7  ;;  %v1167_v22 = vunpack.c.l.bf16 %v1727_v9  ;;  %v1688_v12 = vld [vmem:[%s2100_s13 + $0x3c] sm:$0xe] }
  0x69   : > { %v1047_v23 = vmul.f32 %v2167_v59, %v1023_v17  ;;  %v1099_v24 = vrot.slane %v1045_v18, 1  ;;  %v1190_v28 = vmul.f32 %v2177_v8, %v963_v7  ;;  %v1191_v29 = vmul.f32 %v2177_v8, %v1023_v17 }
  0x6a   : > { %v1002_v31 = vadd.f32 %v986_v13, %v926_v19  ;;  %v1003_v32 = vadd.f32 %v987_v16, %v927_v20  ;;  %v1100_v33 = vrot.slane %v1046_v21, 1  ;;  %v1189_v34 = vmul.f32 %v2177_v8, %v1167_v22 }
  0x6b   : > { %v1102_v35 = vrot.slane %v1047_v23, 1  ;;  %v1244_v36 = vrot.slane %v1190_v28, 2  ;;  %v1246_v37 = vrot.slane %v1191_v29, 2  ;;  %v258_v58 = vmul.f32 %v2292_v25, %v2098_v0 }
  0x6c   : > { %v1101_v38 = vsel %vm354_vm0, %v1099_v24, %v1100_v33  ;;  %v1243_v40 = vrot.slane %v1189_v34, 2  ;;  %v259_v41 = vmul.f32 %v2294_v27, %v2098_v0  ;;  %v294_v42 = vunpack.c.l.bf16 %v286_v30 }
  0x6d   : > { %v1103_v44 = vsel %vm354_vm0, %v1100_v33, %v1102_v35  ;;  %v1146_v45 = vadd.f32 %v1101_v38, %v1002_v31  ;;  %v1247_v4 = vsel %vm499_vm1, %v1244_v36, %v1246_v37  ;;  %v318_v46 = vmul.f32 %v2292_v25, %v2105_v1  ;;  %v1718_v37 = vld [vmem:[%s2100_s13 + $0x50] sm:$0x1] }
  0x6e   : > { %v1147_v47 = vadd.f32 %v1103_v44, %v1003_v32  ;;  %v1245_v48 = vsel %vm499_vm1, %v1243_v40, %v1244_v36  ;;  %v319_v49 = vmul.f32 %v2294_v27, %v2105_v1  ;;  %v320_v50 = vmul.f32 %v2105_v1, %v294_v42  ;;  %v1805_v32 = vld [vmem:[%s2100_s13 + $0x48] sm:$0xff]  }
  0x6f   : > { %v1290_v52 = vadd.f32 %v1245_v48, %v1146_v45  ;;  %v375_v54 = vrot.slane %v318_v46, 1  ;;  %v439_v55 = vunpack.c.l.bf16 %v431_v43  ;;  %v464_v56 = vmul.f32 %v2294_v27, %v2110_v2 }
  0x70   : > { %v1291_v57 = vadd.f32 %v1247_v4, %v1147_v47  ;;  %v376_v60 = vrot.slane %v319_v49, 1  ;;  %v378_v25 = vrot.slane %v320_v50, 1  ;;  %v465_v61 = vmul.f32 %v2110_v2, %v294_v42 }
  0x71   : > { %v463_v62 = vmul.f32 %v2110_v2, %v439_v55  ;;  %v521_v63 = vrot.slane %v464_v56, 2  ;;  %v600_v3 = vunpack.c.l.bf16 %v1664_v51  ;;  %v601_v5 = vunpack.c.h.bf16 %v1664_v51 }
  0x72   : > { %v1311_v7 = vpack.c.bf16 %v1291_v57, %v1290_v52  ;;  %v377_v9 = vsel %vm354_vm0, %v375_v54, %v376_v60  ;;  %v379_v10 = vsel %vm354_vm0, %v376_v60, %v378_v25  ;;  %v523_v11 = vrot.slane %v465_v61, 2 }
  0x73   : > { %v419_v13 = vadd.f32 %v377_v9, %v258_v58  ;;  %v420_v27 = vadd.f32 %v379_v10, %v259_v41  ;;  %v520_v14 = vrot.slane %v463_v62, 2  ;;  %v624_v16 = vmul.f32 %v2121_v15, %v600_v3  ;;  %v1728_v58 = vld [vmem:[%s2100_s13 + $0x48] sm:$0xe]  ;;  %v287_v10 = vld [vmem:[%s2100_s13 + $0x44] sm:$0x1] }
  0x74   : > { %1865 = vmatprep.subr.msk.bf16.mxu0 %vm1384_vm2, %v1311_v7  ;;  %1866 = vmatprep.subr.msk.bf16.mxu1 %vm1384_vm2, %v1311_v7  ;;  %v1407_v17 = vsel %vm1384_vm2, %v1311_v7, 0  ;;  %v524_v18 = vsel %vm499_vm1, %v521_v63, %v523_v11  ;;  %v625_v19 = vmul.f32 %v2121_v15, %v601_v5  ;;  %v660_v20 = vunpack.c.l.bf16 %v1678_v6 }
  0x75   : > { %1826 = vmatpush3.bf16.xpose.msra.mxu0 %v1407_v17  ;;  %1854 = vmatpush3.bf16.xpose.msra.mxu1 %v1407_v17  ;;  %v522_v21 = vsel %vm499_vm1, %v520_v14, %v521_v63  ;;  %v565_v22 = vadd.f32 %v524_v18, %v420_v27  ;;  %v684_v23 = vmul.f32 %v2134_v26, %v600_v3  ;;  %v804_v24 = vunpack.c.l.bf16 %v1688_v12  ;;  %v221_v3 = vld [vmem:[%s2100_s13 + $0x3c] sm:$0xff]  }
  0x76   : > { %v564_v28 = vadd.f32 %v522_v21, %v419_v13  ;;  %v685_v29 = vmul.f32 %v2134_v26, %v601_v5  ;;  %v686_v30 = vmul.f32 %v2134_v26, %v660_v20  ;;  %v829_v31 = vmul.f32 %v2145_v39, %v601_v5 }
  0x77   : > { %v641_v33 = vadd.f32 %v625_v19, %v565_v22  ;;  %v740_v34 = vrot.slane %v684_v23, 1  ;;  %v828_v35 = vmul.f32 %v2145_v39, %v804_v24  ;;  %v830_v36 = vmul.f32 %v2145_v39, %v660_v20  ;;  %v432_v23 = vld [vmem:[%s2100_s13 + $0x3c] sm:$0xe] }
  0x78   : > { %v640_v38 = vadd.f32 %v624_v16, %v564_v28  ;;  %v741_v40 = vrot.slane %v685_v29, 1  ;;  %v743_v41 = vrot.slane %v686_v30, 1  ;;  %v885_v42 = vrot.slane %v829_v31, 2 }
  0x79   : > { %v884_v43 = vrot.slane %v828_v35, 2  ;;  %v887_v44 = vrot.slane %v830_v36, 2  ;;  %v2405_v45 = vunpack.c.l.bf16 %v1805_v32  ;;  %v2407_v4 = vunpack.c.h.bf16 %v1805_v32 }
  0x7a   : > { %v742_v46 = vsel %vm354_vm0, %v740_v34, %v741_v40  ;;  %v744_v47 = vsel %vm354_vm0, %v741_v40, %v743_v41  ;;  %v1024_v48 = vunpack.c.l.bf16 %v1718_v37  ;;  %v1168_v49 = vunpack.c.l.bf16 %v1728_v58 }
  0x7b   : > { %v784_v50 = vadd.f32 %v742_v46, %v640_v38  ;;  %v785_v51 = vadd.f32 %v744_v47, %v641_v33  ;;  %v886_v52 = vsel %vm499_vm1, %v884_v43, %v885_v42  ;;  %v888_v54 = vsel %vm499_vm1, %v885_v42, %v887_v44  ;;  %v1679_v38 = vld [vmem:[%s2100_s13 + $0x50] sm:$0x1] }
  0x7c   : > { %v988_v55 = vmul.f32 %v2405_v45, %v2157_v53  ;;  %v989_v56 = vmul.f32 %v2407_v4, %v2157_v53  ;;  %v1048_v57 = vmul.f32 %v2405_v45, %v2167_v59  ;;  %v1049_v60 = vmul.f32 %v2407_v4, %v2167_v59 }
  0x7d   : > { %v928_v25 = vadd.f32 %v886_v52, %v784_v50  ;;  %v929_v61 = vadd.f32 %v888_v54, %v785_v51  ;;  %v1050_v62 = vmul.f32 %v2167_v59, %v1024_v48  ;;  %v1192_v63 = vmul.f32 %v2177_v8, %v1168_v49 }
  0x7e   : > { %v1104_v5 = vrot.slane %v1048_v57, 1  ;;  %v1105_v6 = vrot.slane %v1049_v60, 1  ;;  %v1193_v7 = vmul.f32 %v2407_v4, %v2177_v8  ;;  %v1194_v9 = vmul.f32 %v2177_v8, %v1024_v48  ;;  %v1689_v48 = vld [vmem:[%s2100_s13 + $0x48] sm:$0xe] }
  0x7f   : > { %v1004_v11 = vadd.f32 %v988_v55, %v928_v25  ;;  %v1005_v12 = vadd.f32 %v989_v56, %v929_v61  ;;  %v1107_v13 = vrot.slane %v1050_v62, 1  ;;  %v1248_v27 = vrot.slane %v1192_v63, 2 }
  0x80   : > { %v1106_v14 = vsel %vm354_vm0, %v1104_v5, %v1105_v6  ;;  %v1249_v16 = vrot.slane %v1193_v7, 2  ;;  %v1251_v17 = vrot.slane %v1194_v9, 2  ;;  %v237_v18 = vunpack.c.l.bf16 %v221_v3 }
  0x81   : > { %v1108_v19 = vsel %vm354_vm0, %v1105_v6, %v1107_v13  ;;  %v1148_v20 = vadd.f32 %v1106_v14, %v1004_v11  ;;  %v238_v21 = vunpack.c.h.bf16 %v221_v3  ;;  %v295_v22 = vunpack.c.l.bf16 %v287_v10  ;;  %v1706_v3 = vld [vmem:[%s2100_s13 + $0x54] sm:$0xff]  }
  0x82   : > { %v1149_v24 = vadd.f32 %v1108_v19, %v1005_v12  ;;  %v1250_v28 = vsel %vm499_vm1, %v1248_v27, %v1249_v16  ;;  %v1252_v29 = vsel %vm499_vm1, %v1249_v16, %v1251_v17  ;;  %v260_v30 = vmul.f32 %v2098_v0, %v237_v18 }
  0x83   : > { %v1292_v31 = vadd.f32 %v1250_v28, %v1148_v20  ;;  %v261_v32 = vmul.f32 %v2098_v0, %v238_v21  ;;  %v321_v33 = vmul.f32 %v2105_v1, %v237_v18  ;;  %v322_v34 = vmul.f32 %v2105_v1, %v238_v21 }
  0x84   : > { %v1293_v35 = vadd.f32 %v1252_v29, %v1149_v24  ;;  %v323_v36 = vmul.f32 %v2105_v1, %v295_v22  ;;  %v440_v37 = vunpack.c.l.bf16 %v432_v23  ;;  %v467_v58 = vmul.f32 %v2110_v2, %v238_v21 }
  0x85   : > { %v380_v40 = vrot.slane %v321_v33, 1  ;;  %v381_v41 = vrot.slane %v322_v34, 1  ;;  %v468_v42 = vmul.f32 %v2110_v2, %v295_v22  ;;  %v626_v43 = vmul.f32 %v2405_v45, %v2121_v15  ;;  %v1729_v22 = vld [vmem:[%s2100_s13 + $0x54] sm:$0xe] }
  0x86   : > { %v1312_v0 = vpack.c.bf16 %v1293_v35, %v1292_v31  ;;  %v383_v44 = vrot.slane %v323_v36, 1  ;;  %v466_v46 = vmul.f32 %v2110_v2, %v440_v37  ;;  %v526_v47 = vrot.slane %v467_v58, 2 }
  0x87   : > { %v382_v49 = vsel %vm354_vm0, %v380_v40, %v381_v41  ;;  %v528_v1 = vrot.slane %v468_v42, 2  ;;  %v627_v50 = vmul.f32 %v2407_v4, %v2121_v15  ;;  %v661_v51 = vunpack.c.l.bf16 %v1679_v38 }
  0x88   : > { %1867 = vmatprep.subr.msk.bf16.mxu0 %vm1384_vm2, %v1312_v0  ;;  %1868 = vmatprep.subr.msk.bf16.mxu1 %vm1384_vm2, %v1312_v0  ;;  %v1410_v52 = vsel %vm1384_vm2, %v1312_v0, 0  ;;  %v384_v54 = vsel %vm354_vm0, %v381_v41, %v383_v44  ;;  %v421_v55 = vadd.f32 %v382_v49, %v260_v30  ;;  %v525_v2 = vrot.slane %v466_v46, 2  ;;  %v288_v41 = vld [vmem:[%s2100_s13 + $0x50] sm:$0x1] }
  0x89   : > { %1828 = vmatpush3.bf16.xpose.msra.mxu0 %v1410_v52  ;;  %1855 = vmatpush3.bf16.xpose.msra.mxu1 %v1410_v52  ;;  %v422_v56 = vadd.f32 %v384_v54, %v261_v32  ;;  %v529_v57 = vsel %vm499_vm1, %v526_v47, %v528_v1  ;;  %v687_v15 = vmul.f32 %v2405_v45, %v2134_v26  ;;  %v805_v60 = vunpack.c.l.bf16 %v1689_v48  ;;  %v2482_v48 = vld [vmem:[%s2705_s1] ss:$0 sm:$0xff] }
  0x8a   : > { %v527_v25 = vsel %vm499_vm1, %v525_v2, %v526_v47  ;;  %v688_v61 = vmul.f32 %v2407_v4, %v2134_v26  ;;  %v689_v62 = vmul.f32 %v2134_v26, %v661_v51  ;;  %v832_v63 = vmul.f32 %v2407_v4, %v2145_v39  ;;  %v1719_v26 = vld [vmem:[%s2100_s13 + $0x5c] sm:$0x1]  ;;  %v2495_v2 = vld [vmem:[%s2705_s1 + $0x1] ss:$0 sm:$0xff] }
  0x8b   : > { %v566_v5 = vadd.f32 %v527_v25, %v421_v55  ;;  %v567_v6 = vadd.f32 %v529_v57, %v422_v56  ;;  %v745_v7 = vrot.slane %v687_v15, 1  ;;  %v831_v9 = vmul.f32 %v2145_v39, %v805_v60 }
  0x8c   : > { %v746_v10 = vrot.slane %v688_v61, 1  ;;  %v748_v11 = vrot.slane %v689_v62, 1  ;;  %v833_v12 = vmul.f32 %v2145_v39, %v661_v51  ;;  %v890_v13 = vrot.slane %v832_v63, 2  ;;  %v1668_v61 = vld [vmem:[%s2100_s13 + $0x54] sm:$0xff]  }
  0x8d   : > { %v642_v27 = vadd.f32 %v626_v43, %v566_v5  ;;  %v643_v14 = vadd.f32 %v627_v50, %v567_v6  ;;  %v889_v16 = vrot.slane %v831_v9, 2  ;;  %v966_v17 = vunpack.c.l.bf16 %v1706_v3  ;;  %v2507_v5 = vld [vmem:[%s2705_s1 + $0x2] ss:$0 sm:$0xff] }
  0x8e   : > { %v747_v18 = vsel %vm354_vm0, %v745_v7, %v746_v10  ;;  %v749_v19 = vsel %vm354_vm0, %v746_v10, %v748_v11  ;;  %v892_v20 = vrot.slane %v833_v12, 2  ;;  %v967_v21 = vunpack.c.h.bf16 %v1706_v3 }
  0x8f   : > { %v786_v23 = vadd.f32 %v747_v18, %v642_v27  ;;  %v787_v24 = vadd.f32 %v749_v19, %v643_v14  ;;  %v891_v28 = vsel %vm499_vm1, %v889_v16, %v890_v13  ;;  %v990_v39 = vmul.f32 %v2157_v53, %v966_v17  ;;  %v1680_v14 = vld [vmem:[%s2100_s13 + $0x5c] sm:$0x1]  ;;  %v1690_v19 = vld [vmem:[%s2100_s13 + $0x54] sm:$0xe] }
  0x90   : > { %v893_v29 = vsel %vm499_vm1, %v890_v13, %v892_v20  ;;  %v991_v30 = vmul.f32 %v2157_v53, %v967_v21  ;;  %v1025_v31 = vunpack.c.l.bf16 %v1719_v26  ;;  %v1051_v32 = vmul.f32 %v2167_v59, %v966_v17 }
  0x91   : > { %v930_v33 = vadd.f32 %v891_v28, %v786_v23  ;;  %v931_v34 = vadd.f32 %v893_v29, %v787_v24  ;;  %v1052_v35 = vmul.f32 %v2167_v59, %v967_v21  ;;  %v1169_v36 = vunpack.c.l.bf16 %v1729_v22  ;;  %v2520_v22 = vld [vmem:[%s2705_s1 + $0x3] ss:$0 sm:$0xff] }
  0x92   : > { %v1053_v37 = vmul.f32 %v2167_v59, %v1025_v31  ;;  %v1109_v58 = vrot.slane %v1051_v32, 1  ;;  %v1196_v38 = vmul.f32 %v2177_v8, %v967_v21  ;;  %v1197_v40 = vmul.f32 %v2177_v8, %v1025_v31  ;;  %v2532_v32 = vld [vmem:[%s2705_s1 + $0x4] ss:$0 sm:$0xff] }
  0x93   : > { %v1006_v42 = vadd.f32 %v990_v39, %v930_v33  ;;  %v1007_v43 = vadd.f32 %v991_v30, %v931_v34  ;;  %v1110_v53 = vrot.slane %v1052_v35, 1  ;;  %v1195_v0 = vmul.f32 %v2177_v8, %v1169_v36  ;;  %v433_v8 = vld [vmem:[%s2100_s13 + $0x48] sm:$0xe] }
  0x94   : > { %v1112_v44 = vrot.slane %v1053_v37, 1  ;;  %v1254_v46 = vrot.slane %v1196_v38, 2  ;;  %v1256_v47 = vrot.slane %v1197_v40, 2  ;;  %v262_v59 = vmul.f32 %v2482_v48, %v2405_v45  ;;  %v1806_v40 = vld [vmem:[%s2100_s13 + $0x60] sm:$0xff]  }
  0x95   : > { %v1111_v49 = vsel %vm354_vm0, %v1109_v58, %v1110_v53  ;;  %v1253_v1 = vrot.slane %v1195_v0, 2  ;;  %v263_v50 = vmul.f32 %v2482_v48, %v2407_v4  ;;  %v296_v51 = vunpack.c.l.bf16 %v288_v41  ;;  %v2540_v58 = vld [vmem:[%s2705_s1 + $0x5] ss:$0 sm:$0xff]  ;;  %v1720_v0 = vld [vmem:[%s2100_s13 + $0x68] sm:$0x1] }
  0x96   : > { %v1113_v52 = vsel %vm354_vm0, %v1110_v53, %v1112_v44  ;;  %v1150_v54 = vadd.f32 %v1111_v49, %v1006_v42  ;;  %v1257_v55 = vsel %vm499_vm1, %v1254_v46, %v1256_v47  ;;  %v324_v56 = vmul.f32 %v2495_v2, %v2405_v45  ;;  %v1730_v44 = vld [vmem:[%s2100_s13 + $0x60] sm:$0xe] }
  0x97   : > { %v1151_v57 = vadd.f32 %v1113_v52, %v1007_v43  ;;  %v1255_v15 = vsel %vm499_vm1, %v1253_v1, %v1254_v46  ;;  %v325_v60 = vmul.f32 %v2495_v2, %v2407_v4  ;;  %v326_v25 = vmul.f32 %v2495_v2, %v296_v51 }
  0x98   : > { %v1294_v62 = vadd.f32 %v1255_v15, %v1150_v54  ;;  %v385_v63 = vrot.slane %v324_v56, 1  ;;  %v441_v3 = vunpack.c.l.bf16 %v433_v8  ;;  %v470_v45 = vmul.f32 %v2507_v5, %v2407_v4 }
  0x99   : > { %v1295_v6 = vadd.f32 %v1257_v55, %v1151_v57  ;;  %v386_v7 = vrot.slane %v325_v60, 1  ;;  %v388_v9 = vrot.slane %v326_v25, 1  ;;  %v471_v10 = vmul.f32 %v2507_v5, %v296_v51 }
  0x9a   : > { %v469_v11 = vmul.f32 %v2507_v5, %v441_v3  ;;  %v531_v12 = vrot.slane %v470_v45, 2  ;;  %v604_v13 = vunpack.c.l.bf16 %v1668_v61  ;;  %v605_v27 = vunpack.c.h.bf16 %v1668_v61  ;;  %v2559_v61 = vld [vmem:[%s2705_s1 + $0x6] ss:$0 sm:$0xff]  ;;  %v2568_v3 = vld [vmem:[%s2705_s1 + $0x7] ss:$0 sm:$0xff] }
  0x9b   : > { %v1313_v16 = vpack.c.bf16 %v1295_v6, %v1294_v62  ;;  %v387_v17 = vsel %vm354_vm0, %v385_v63, %v386_v7  ;;  %v389_v26 = vsel %vm354_vm0, %v386_v7, %v388_v9  ;;  %v533_v18 = vrot.slane %v471_v10, 2 }
  0x9c   : > { %v423_v20 = vadd.f32 %v387_v17, %v262_v59  ;;  %v424_v4 = vadd.f32 %v389_v26, %v263_v50  ;;  %v530_v21 = vrot.slane %v469_v11, 2  ;;  %v628_v23 = vmul.f32 %v2520_v22, %v604_v13  ;;  %v2578_v11 = vld [vmem:[%s2705_s1 + $0x8] ss:$0 sm:$0xff]  ;;  %v289_v26 = vld [vmem:[%s2100_s13 + $0x5c] sm:$0x1] }
  0x9d   : > { %1869 = vmatprep.subr.msk.bf16.mxu0 %vm1384_vm2, %v1313_v16  ;;  %1870 = vmatprep.subr.msk.bf16.mxu1 %vm1384_vm2, %v1313_v16  ;;  %v1413_v24 = vsel %vm1384_vm2, %v1313_v16, 0  ;;  %v534_v28 = vsel %vm499_vm1, %v531_v12, %v533_v18  ;;  %v629_v39 = vmul.f32 %v2520_v22, %v605_v27  ;;  %v662_v29 = vunpack.c.l.bf16 %v1680_v14 }
  0x9e   : > { %1830 = vmatpush3.bf16.xpose.msra.mxu0 %v1413_v24  ;;  %1856 = vmatpush3.bf16.xpose.msra.mxu1 %v1413_v24  ;;  %v532_v30 = vsel %vm499_vm1, %v530_v21, %v531_v12  ;;  %v569_v31 = vadd.f32 %v534_v28, %v424_v4  ;;  %v690_v33 = vmul.f32 %v2532_v32, %v604_v13  ;;  %v806_v34 = vunpack.c.l.bf16 %v1690_v19  ;;  %v225_v13 = vld [vmem:[%s2100_s13 + $0x54] sm:$0xff]  }
  0x9f   : > { %v568_v35 = vadd.f32 %v532_v30, %v423_v20  ;;  %v691_v36 = vmul.f32 %v2532_v32, %v605_v27  ;;  %v692_v37 = vmul.f32 %v2532_v32, %v662_v29  ;;  %v835_v38 = vmul.f32 %v2540_v58, %v605_v27 }
  0xa0   : > { %v645_v41 = vadd.f32 %v629_v39, %v569_v31  ;;  %v750_v42 = vrot.slane %v690_v33, 1  ;;  %v834_v43 = vmul.f32 %v2540_v58, %v806_v34  ;;  %v836_v53 = vmul.f32 %v2540_v58, %v662_v29  ;;  %v434_v33 = vld [vmem:[%s2100_s13 + $0x54] sm:$0xe] }
  0xa1   : > { %v644_v46 = vadd.f32 %v628_v23, %v568_v35  ;;  %v751_v47 = vrot.slane %v691_v36, 1  ;;  %v753_v59 = vrot.slane %v692_v37, 1  ;;  %v895_v49 = vrot.slane %v835_v38, 2 }
  0xa2   : > { %v894_v1 = vrot.slane %v834_v43, 2  ;;  %v897_v50 = vrot.slane %v836_v53, 2  ;;  %v2548_v51 = vunpack.c.l.bf16 %v1806_v40  ;;  %v2550_v8 = vunpack.c.h.bf16 %v1806_v40 }
  0xa3   : > { %v752_v52 = vsel %vm354_vm0, %v750_v42, %v751_v47  ;;  %v754_v54 = vsel %vm354_vm0, %v751_v47, %v753_v59  ;;  %v1026_v55 = vunpack.c.l.bf16 %v1720_v0  ;;  %v1170_v56 = vunpack.c.l.bf16 %v1730_v44 }
  0xa4   : > { %v788_v57 = vadd.f32 %v752_v52, %v644_v46  ;;  %v789_v15 = vadd.f32 %v754_v54, %v645_v41  ;;  %v896_v60 = vsel %vm499_vm1, %v894_v1, %v895_v49  ;;  %v898_v25 = vsel %vm499_vm1, %v895_v49, %v897_v50  ;;  %v1681_v46 = vld [vmem:[%s2100_s13 + $0x68] sm:$0x1] }
  0xa5   : > { %v992_v62 = vmul.f32 %v2559_v61, %v2548_v51  ;;  %v993_v63 = vmul.f32 %v2559_v61, %v2550_v8  ;;  %v1054_v45 = vmul.f32 %v2568_v3, %v2548_v51  ;;  %v1055_v6 = vmul.f32 %v2568_v3, %v2550_v8 }
  0xa6   : > { %v932_v7 = vadd.f32 %v896_v60, %v788_v57  ;;  %v933_v9 = vadd.f32 %v898_v25, %v789_v15  ;;  %v1056_v10 = vmul.f32 %v2568_v3, %v1026_v55  ;;  %v1198_v12 = vmul.f32 %v2578_v11, %v1170_v56 }
  0xa7   : > { %v1114_v27 = vrot.slane %v1054_v45, 1  ;;  %v1115_v14 = vrot.slane %v1055_v6, 1  ;;  %v1199_v16 = vmul.f32 %v2578_v11, %v2550_v8  ;;  %v1200_v17 = vmul.f32 %v2578_v11, %v1026_v55  ;;  %v1691_v55 = vld [vmem:[%s2100_s13 + $0x60] sm:$0xe] }
  0xa8   : > { %v1008_v18 = vadd.f32 %v992_v62, %v932_v7  ;;  %v1009_v19 = vadd.f32 %v993_v63, %v933_v9  ;;  %v1117_v20 = vrot.slane %v1056_v10, 1  ;;  %v1258_v4 = vrot.slane %v1198_v12, 2 }
  0xa9   : > { %v1116_v21 = vsel %vm354_vm0, %v1114_v27, %v1115_v14  ;;  %v1259_v23 = vrot.slane %v1199_v16, 2  ;;  %v1261_v24 = vrot.slane %v1200_v17, 2  ;;  %v241_v28 = vunpack.c.l.bf16 %v225_v13 }
  0xaa   : > { %v1118_v39 = vsel %vm354_vm0, %v1115_v14, %v1117_v20  ;;  %v1152_v29 = vadd.f32 %v1116_v21, %v1008_v18  ;;  %v242_v30 = vunpack.c.h.bf16 %v225_v13  ;;  %v297_v31 = vunpack.c.l.bf16 %v289_v26  ;;  %v1710_v13 = vld [vmem:[%s2100_s13 + $0x6c] sm:$0xff]  }
  0xab   : > { %v1153_v34 = vadd.f32 %v1118_v39, %v1009_v19  ;;  %v1260_v35 = vsel %vm499_vm1, %v1258_v4, %v1259_v23  ;;  %v1262_v36 = vsel %vm499_vm1, %v1259_v23, %v1261_v24  ;;  %v264_v37 = vmul.f32 %v2482_v48, %v241_v28 }
  0xac   : > { %v1296_v38 = vadd.f32 %v1260_v35, %v1152_v29  ;;  %v265_v40 = vmul.f32 %v2482_v48, %v242_v30  ;;  %v327_v41 = vmul.f32 %v2495_v2, %v241_v28  ;;  %v328_v42 = vmul.f32 %v2495_v2, %v242_v30  ;;  %v1731_v29 = vld [vmem:[%s2100_s13 + $0x6c] sm:$0xe] }
  0xad   : > { %v1297_v43 = vadd.f32 %v1262_v36, %v1153_v34  ;;  %v329_v53 = vmul.f32 %v2495_v2, %v297_v31  ;;  %v442_v0 = vunpack.c.l.bf16 %v434_v33  ;;  %v473_v44 = vmul.f32 %v2507_v5, %v242_v30 }
  0xae   : > { %v390_v47 = vrot.slane %v327_v41, 1  ;;  %v391_v59 = vrot.slane %v328_v42, 1  ;;  %v474_v49 = vmul.f32 %v2507_v5, %v297_v31  ;;  %v630_v1 = vmul.f32 %v2520_v22, %v2548_v51 }
  0xaf   : > { %v1314_v48 = vpack.c.bf16 %v1297_v43, %v1296_v38  ;;  %v393_v50 = vrot.slane %v329_v53, 1  ;;  %v472_v52 = vmul.f32 %v2507_v5, %v442_v0  ;;  %v536_v54 = vrot.slane %v473_v44, 2 }
  0xb0   : > { %v392_v56 = vsel %vm354_vm0, %v390_v47, %v391_v59  ;;  %v538_v2 = vrot.slane %v474_v49, 2  ;;  %v631_v57 = vmul.f32 %v2520_v22, %v2550_v8  ;;  %v663_v15 = vunpack.c.l.bf16 %v1681_v46  ;;  %v1318_v49 = vld [vmem:[%s2707_s3 + $0x10] sm:$0xff] }
  0xb1   : > { %1871 = vmatprep.subr.msk.bf16.mxu0 %vm1384_vm2, %v1314_v48  ;;  %1872 = vmatprep.subr.msk.bf16.mxu1 %vm1384_vm2, %v1314_v48  ;;  %v1416_v60 = vsel %vm1384_vm2, %v1314_v48, 0  ;;  %v394_v25 = vsel %vm354_vm0, %v391_v59, %v393_v50  ;;  %v425_v62 = vadd.f32 %v392_v56, %v264_v37  ;;  %v535_v5 = vrot.slane %v472_v52, 2 }
  0xb2   : > { %1832 = vmatpush3.bf16.xpose.msra.mxu0 %v1416_v60  ;;  %1857 = vmatpush3.bf16.xpose.msra.mxu1 %v1416_v60  ;;  %v426_v63 = vadd.f32 %v394_v25, %v265_v40  ;;  %v539_v45 = vsel %vm499_vm1, %v536_v54, %v538_v2  ;;  %v693_v22 = vmul.f32 %v2532_v32, %v2548_v51  ;;  %v807_v6 = vunpack.c.l.bf16 %v1691_v55  ;;  %v1319_v60 = vld [vmem:[%s2707_s3 + $0x18] sm:$0xff]  ;;  %v1317_v25 = vld [vmem:[%s2707_s3 + $0x8] sm:$0xff] }
  0xb3   : > { %v537_v7 = vsel %vm499_vm1, %v535_v5, %v536_v54  ;;  %v694_v9 = vmul.f32 %v2532_v32, %v2550_v8  ;;  %v695_v10 = vmul.f32 %v2532_v32, %v663_v15  ;;  %v838_v12 = vmul.f32 %v2540_v58, %v2550_v8  ;;  %v1721_v32 = vld [vmem:[%s2100_s13 + $0x74] sm:$0x1] }
  0xb4   : > { %v570_v27 = vadd.f32 %v537_v7, %v425_v62  ;;  %v571_v14 = vadd.f32 %v539_v45, %v426_v63  ;;  %v755_v16 = vrot.slane %v693_v22, 1  ;;  %v837_v17 = vmul.f32 %v2540_v58, %v807_v6  ;;  %v1321_v45 = vld [vmem:[%s2707_s3 + $0x28] sm:$0xff]  ;;  %v1320_v22 = vld [vmem:[%s2707_s3 + $0x20] sm:$0xff]  ;;  %v1323_v7 = vld [vmem:[%s2707_s3 + $0x38] sm:$0xff] }
  0xb5   : > { %v756_v51 = vrot.slane %v694_v9, 1  ;;  %v758_v26 = vrot.slane %v695_v10, 1  ;;  %v839_v18 = vmul.f32 %v2540_v58, %v663_v15  ;;  %v900_v19 = vrot.slane %v838_v12, 2  ;;  %v1322_v9 = vld [vmem:[%s2707_s3 + $0x30] sm:$0xff]  ;;  %v1937_v10 = vld [vmem:[%s2706_s2 + $0x8] sm:$0xff]   ;;  %v1938_v12 = vld [vmem:[%s2706_s2 + $0x18] sm:$0xff]  }
  0xb6   : > { %v646_v20 = vadd.f32 %v630_v1, %v570_v27  ;;  %v647_v4 = vadd.f32 %v631_v57, %v571_v14  ;;  %v899_v21 = vrot.slane %v837_v17, 2  ;;  %v970_v23 = vunpack.c.l.bf16 %v1710_v13  ;;  %v1316_v1 = vld [vmem:[%s2707_s3] sm:$0xff] }
  0xb7   : > { %v757_v24 = vsel %vm354_vm0, %v755_v16, %v756_v51  ;;  %v759_v8 = vsel %vm354_vm0, %v756_v51, %v758_v26  ;;  %v902_v28 = vrot.slane %v839_v18, 2  ;;  %v971_v39 = vunpack.c.h.bf16 %v1710_v13 }
  0xb8   : > { %v790_v30 = vadd.f32 %v757_v24, %v646_v20  ;;  %v791_v31 = vadd.f32 %v759_v8, %v647_v4  ;;  %v901_v33 = vsel %vm499_vm1, %v899_v21, %v900_v19  ;;  %v994_v34 = vmul.f32 %v2559_v61, %v970_v23 }
  0xb9   : > { %v903_v58 = vsel %vm499_vm1, %v900_v19, %v902_v28  ;;  %v995_v35 = vmul.f32 %v2559_v61, %v971_v39  ;;  %v1027_v36 = vunpack.c.l.bf16 %v1721_v32  ;;  %v1057_v37 = vmul.f32 %v2568_v3, %v970_v23 }
  0xba   : > { %v934_v38 = vadd.f32 %v901_v33, %v790_v30  ;;  %v935_v40 = vadd.f32 %v903_v58, %v791_v31  ;;  %v1058_v41 = vmul.f32 %v2568_v3, %v971_v39  ;;  %v1171_v42 = vunpack.c.l.bf16 %v1731_v29 }
  0xbb   : > { %v1059_v43 = vmul.f32 %v2568_v3, %v1027_v36  ;;  %v1119_v53 = vrot.slane %v1057_v37, 1  ;;  %v1202_v0 = vmul.f32 %v2578_v11, %v971_v39  ;;  %v1203_v44 = vmul.f32 %v2578_v11, %v1027_v36 }
  0xbc   : > { %v1010_v46 = vadd.f32 %v994_v34, %v934_v38  ;;  %v1011_v47 = vadd.f32 %v995_v35, %v935_v40  ;;  %v1120_v59 = vrot.slane %v1058_v41, 1  ;;  %v1201_v61 = vmul.f32 %v2578_v11, %v1171_v42 }
  0xbd   : > { %v1122_v48 = vrot.slane %v1059_v43, 1  ;;  %v1264_v3 = vrot.slane %v1202_v0, 2  ;;  %v1266_v50 = vrot.slane %v1203_v44, 2  ;;  %v2004_v55 = vmov 0  }
  0xbe   : > { %v1121_v52 = vsel %vm354_vm0, %v1119_v53, %v1120_v59  ;;  %v1263_v54 = vrot.slane %v1201_v61, 2  ;;  %1934 = vset.pattern.permute.xlu1 %v2004_v55  ;;  %1933 = vset.pattern.permute.xlu0 %v2004_v55 }
  0xbf   : > { %v1123_v56 = vsel %vm354_vm0, %v1120_v59, %v1122_v48  ;;  %v1154_v11 = vadd.f32 %v1121_v52, %v1010_v46  ;;  %v1267_v2 = vsel %vm499_vm1, %v1264_v3, %v1266_v50  ;;  %1336 = vperm.xlu1 %1934, %v1318_v49   ;;  %1326 = vperm.xlu0 %1933, %v1316_v1  }
  0xc0   : > { %v1155_v57 = vadd.f32 %v1123_v56, %v1011_v47  ;;  %v1265_v15 = vsel %vm499_vm1, %v1263_v54, %v1264_v3 }
  0xc1   : > { %v1298_v62 = vadd.f32 %v1265_v15, %v1154_v11 }
  0xc2   : > { %v1299_v5 = vadd.f32 %v1267_v2, %v1155_v57 }
  0xc3   : > { %1341 = vperm.xlu1 %1934, %v1319_v60   ;;  %1331 = vperm.xlu0 %1933, %v1317_v25  }
  0xc4   : > { %v1315_v63 = vpack.c.bf16 %v1299_v5, %v1298_v62 }
  0xc6   : > { %1873 = vmatprep.subr.msk.bf16.mxu0 %vm1384_vm2, %v1315_v63  ;;  %1874 = vmatprep.subr.msk.bf16.mxu1 %vm1384_vm2, %v1315_v63  ;;  %v1419_v6 = vsel %vm1384_vm2, %v1315_v63, 0 }
  0xc7   : > { %1834 = vmatpush3.bf16.xpose.msra.mxu0 %v1419_v6  ;;  %1858 = vmatpush3.bf16.xpose.msra.mxu1 %v1419_v6 }
  0xc8   : > { %1351 = vperm.xlu1 %1934, %v1321_v45   ;;  %1346 = vperm.xlu0 %1933, %v1320_v22  }
  0xcc   : > { %1361 = vperm.xlu1 %1934, %v1323_v7   ;;  %1356 = vperm.xlu0 %1933, %v1322_v9  }
  0xce   : > { %1836 = vmatmul.mubr.msk.bf16.vlgmr.msra.gmra.mrb[0].mxu0 %vm1384_vm2, %v1937_v10  ;;  %1840 = vmatmul.mubr.msk.bf16.vlgmr.msra.gmra.mrb[0].mxu1 %vm1384_vm2, %v1938_v12 }
 0x13e   : > { %v1337_v13 = vpop.permute.xlu1 %1336  ;;  %v1327_v27 = vpop.permute.xlu0 %1326 }
 0x142   : > { %v1342_v14 = vpop.permute.xlu1 %1341  ;;  %v1332_v16 = vpop.permute.xlu0 %1331 }
 0x147   : > { %v1352_v17 = vpop.permute.xlu1 %1351  ;;  %v1347_v51 = vpop.permute.xlu0 %1346 }
 0x14b   : > { %v1362_v26 = vpop.permute.xlu1 %1361  ;;  %v1357_v18 = vpop.permute.xlu0 %1356 }
 0x1a1   : > { %v1837_v19 = vpop.f32.mrb[0].mxu0  ;;  %v1841_v20 = vpop.f32.mrb[0].mxu1  ;;  %1500 = sbr.rel (!%p2076_p5) target bundleno = 433 (0x1b1), region = 40 }
 0x1a2   : > { %v1464_v4 = vadd.f32 %v1837_v19, %v1337_v13  ;;  %v1480_v21 = vadd.f32 %v1841_v20, %v1357_v18  ;;  %v1455_v23 = vpop.f32.mrb[1].mxu0  ;;  %v1471_v32 = vpop.f32.mrb[1].mxu1 }
 0x1a3   : > { %v1456_v24 = vadd.f32 %v1455_v23, %v1327_v27  ;;  %v1472_v8 = vadd.f32 %v1471_v32, %v1347_v51  ;;  %v1838_v28 = vpop.f32.mrb[2].mxu0  ;;  %v1842_v39 = vpop.f32.mrb[2].mxu1 }
 0x1a4   : > { %1488 = vst [vmem:[%s200_s25 + $0x10] sm:$0xff] %v1464_v4  ;;  %1492 = vst [vmem:[%s200_s25 + $0x30] sm:$0xff] %v1480_v21  ;;  %v1467_v29 = vadd.f32 %v1838_v28, %v1342_v14  ;;  %v1483_v30 = vadd.f32 %v1842_v39, %v1362_v26  ;;  %v1458_v31 = vpop.f32.mrb[3].mxu0  ;;  %v1474_v33 = vpop.f32.mrb[3].mxu1 }
 0x1a5   : > { %1486 = vst [vmem:[%s200_s25] sm:$0xff] %v1456_v24  ;;  %1490 = vst [vmem:[%s200_s25 + $0x20] sm:$0xff] %v1472_v8  ;;  %v1459_v34 = vadd.f32 %v1458_v31, %v1332_v16  ;;  %v1475_v58 = vadd.f32 %v1474_v33, %v1352_v17 }
 0x1a6   : > { %1489 = vst [vmem:[%s200_s25 + $0x18] sm:$0xff] %v1467_v29  ;;  %1493 = vst [vmem:[%s200_s25 + $0x38] sm:$0xff] %v1483_v30 }
 0x1a7   : > { %1487 = vst [vmem:[%s200_s25 + $0x8] sm:$0xff] %v1459_v34  ;;  %1491 = vst [vmem:[%s200_s25 + $0x28] sm:$0xff] %v1475_v58 }
 0x1ab   : > { %v1550_v37 = vld [vmem:[%s200_s25 + $0x10] sm:$0xff] }
 0x1ac   : > { %v1546_v35 = vld [vmem:[%s200_s25] sm:$0xff]  ;;  %v1558_v42 = vld [vmem:[%s200_s25 + $0x30] sm:$0xff]  ;;  %1551 = vst [vmem:[%s1504_s6 + $0x20] sm:$0xff] %v1550_v37 }
 0x1ad   : > { %v1552_v38 = vld [vmem:[%s200_s25 + $0x18] sm:$0xff]  ;;  %v1554_v40 = vld [vmem:[%s200_s25 + $0x20] sm:$0xff]  ;;  %1547 = vst [vmem:[%s1504_s6] sm:$0xff] %v1546_v35  ;;  %1559 = vst [vmem:[%s1504_s6 + $0x60] sm:$0xff] %v1558_v42 }
 0x1ae   : > { %v1548_v36 = vld [vmem:[%s200_s25 + $0x8] sm:$0xff]  ;;  %v1560_v43 = vld [vmem:[%s200_s25 + $0x38] sm:$0xff]  ;;  %1553 = vst [vmem:[%s1504_s6 + $0x30] sm:$0xff] %v1552_v38  ;;  %1555 = vst [vmem:[%s1504_s6 + $0x40] sm:$0xff] %v1554_v40 }
 0x1af   : > { %v1556_v41 = vld [vmem:[%s200_s25 + $0x28] sm:$0xff]  ;;  %1549 = vst [vmem:[%s1504_s6 + $0x10] sm:$0xff] %v1548_v36  ;;  %1561 = vst [vmem:[%s1504_s6 + $0x70] sm:$0xff] %v1560_v43 }
 0x1b0   : > { %1557 = vst [vmem:[%s1504_s6 + $0x50] sm:$0xff] %v1556_v41 }
 0x1b1 PF: > { %s14_s21 = sadd.s32 1, %s2002_s21   ;;  %s2710_s15 = smov %s1982_s16 }
 0x1b2   : > { %p11_p10 = scmp.ge.s32.totalorder %s14_s21, 6   ;;  %s2711_s16 = smov %s2087_s30 }
 0x1b3   : > { %s2712_s17 = smov %s1994_s19  ;;  %s2713_s18 = smov %s1998_s20 }
 0x1b4   : > { %s2714_s19 = smov %s2717_s22  ;;  %s2715_s20 = smov %s2721_s23 }
 0x1b5   :  { %13 = sbr.rel (!%p11_p10) target bundleno = 4 (0x4), region = 115 }

</bundles_post_ra>
